<compile_context>
chip_gen: v5e
topology: v5e:2x2
jax: 0.10.0
libtpu: 0.0.40
codegen_flags: <defaults>
</compile_context>

<pallas_src>
import math
import functools

import jax
import jax.numpy as jnp
from jax.experimental import pallas as pl
from jax.experimental.pallas import tpu as pltpu


# -----------------------------------------------------------------------------
# Pallas kernel: one block of TW windows per grid step.
# -----------------------------------------------------------------------------
def _wmsa_kernel(x_ref, bias_ref, *refs, num_heads, head_dim, win_len, has_mask):
    # x_ref:    (TW*L, C)        bf16 tokens of TW windows (window-major rows)
    # bias_ref: (heads, L, L)    f32 relative-position bias (grid-resident)
    # mask_ref: (TW, L, L)       f32 additive mask (only when has_mask)
    # wqkv_ref: (C, 3C)          bf16, transposed, Q columns pre-scaled by 1/sqrt(hd)
    # bqkv_ref: (1, 3C)          f32, Q part pre-scaled
    # wout_ref: (C, C)           bf16, transposed
    # bout_ref: (1, C)           f32
    # o_ref:    (TW*L, C)        output block
    # qkv_ref:  (TW*L, 3C)       bf16 VMEM scratch
    # ctx_ref:  (TW*L, C)        bf16 VMEM scratch (per-head context slabs)
    if has_mask:
        (mask_ref, wqkv_ref, bqkv_ref, wout_ref, bout_ref,
         o_ref, qkv_ref, ctx_ref) = refs
    else:
        (wqkv_ref, bqkv_ref, wout_ref, bout_ref,
         o_ref, qkv_ref, ctx_ref) = refs

    rows, C = x_ref.shape
    L = win_len
    TW = rows // L

    # --- one big QKV projection for all TW*L rows (bf16 MXU, f32 accumulate) ---
    # Result lands in a VMEM scratch so the per-head slices below are plain vector
    # loads instead of slices of a huge live SSA value (bounds live ranges across
    # the statically-unrolled head loop).
    qkv = jnp.dot(x_ref[...], wqkv_ref[...], preferred_element_type=jnp.float32)
    qkv_ref[...] = (qkv + bqkv_ref[...]).astype(jnp.bfloat16)

    # --- attention, batched over the TW windows; heads unrolled statically ---
    for h in range(num_heads):                                       # static unroll
        lo = h * head_dim
        q_h = qkv_ref[:, lo:lo + head_dim].reshape(TW, L, head_dim)
        k_h = qkv_ref[:, C + lo:C + lo + head_dim].reshape(TW, L, head_dim)
        v_h = qkv_ref[:, 2 * C + lo:2 * C + lo + head_dim].reshape(TW, L, head_dim)

        logits = jnp.einsum("wld,wmd->wlm", q_h, k_h,
                            preferred_element_type=jnp.float32)      # (TW, L, L)
        logits = logits + bias_ref[h][None, :, :]
        if has_mask:
            logits = logits + mask_ref[...]

        logits = logits - jnp.max(logits, axis=-1, keepdims=True)
        p = jnp.exp(logits)
        inv = pl.reciprocal(jnp.sum(p, axis=-1, keepdims=True), approx=True)
        atten = (p * inv).astype(jnp.bfloat16)

        o_h = jnp.einsum("wlm,wmd->wld", atten, v_h,
                         preferred_element_type=jnp.float32)         # (TW, L, hd)
        # Write the head's context into its column slab; the full-K output
        # projection happens once, after the head loop.
        ctx_ref[:, lo:lo + head_dim] = (
            o_h.reshape(rows, head_dim).astype(jnp.bfloat16))

    # --- single full-K output projection: (TW*L, C) @ (C, C) ---
    y = jnp.dot(ctx_ref[...], wout_ref[...], preferred_element_type=jnp.float32)
    y = y + bout_ref[...]
    # TODO(synk): nn.Dropout is identity in eval mode; training-mode dropout not implemented.
    o_ref[...] = y.astype(o_ref.dtype)


# -----------------------------------------------------------------------------
# Glue helpers
# -----------------------------------------------------------------------------
def _relative_position_index(s_h, s_w):
    ch, cw = jnp.meshgrid(jnp.arange(s_h), jnp.arange(s_w), indexing="ij")
    coords = jnp.stack([ch, cw]).reshape(2, -1)                  # (2, L)
    rel = coords[:, :, None] - coords[:, None, :]                # (2, L, L)
    rel = rel.transpose(1, 2, 0)                                 # (L, L, 2)
    r0 = rel[..., 0] + (s_h - 1)
    r1 = rel[..., 1] + (s_w - 1)
    return r0 * (2 * s_w - 1) + r1                               # (L, L)


def _pick_windows_per_step(N, nW, L, target_rows=512):
    """Windows per grid step.

    The result always divides N*nW and is either a divisor of nW or a whole
    multiple of nW, so the additive (shifted-window) mask never needs to be
    broadcast over the batch.  Prefers ~target_rows rows/step (MXU-shaped
    matmuls, amortized ~0.35us/step overhead) while keeping >=2 grid steps for
    the BlockSpec pipeline (>=4 preferred so v7x's two TensorCores each get >=2
    pipelined steps), without dropping below ~128 rows of MXU M-dimension.
    """
    B = N * nW
    cands = sorted({d for d in range(1, nW + 1) if nW % d == 0}
                   | {nW * m for m in range(1, N + 1) if N % m == 0})
    cap = max(1, target_rows // max(1, L))
    best = 1
    for c in cands:
        if c <= cap and B // c >= min(2, B):
            best = c
    if B // best < 4:                       # soft preference for >=4 steps
        for c in reversed(cands):
            if c < best and B // c >= 4 and c * L >= 128:
                best = c
                break
    return best


# -----------------------------------------------------------------------------
# Wrapper
# -----------------------------------------------------------------------------
def windowed_mhsa(x, mask, params, *, window_shape, num_heads):
    """x: (N, H, W, C), mask: None or (w_h, w_w, L, L). Returns (N, H, W, C)."""
    N, H, W, C = x.shape
    s_h, s_w = window_shape
    assert H % s_h == 0 and W % s_w == 0 and C % num_heads == 0
    w_h, w_w = H // s_h, W // s_w
    nW = w_h * w_w
    L = s_h * s_w
    B = N * nW
    head_dim = C // num_heads

    TW = _pick_windows_per_step(N, nW, L)
    grid_len = B // TW
    rows = TW * L

    # --- window partition (host glue). Cast to bf16 BEFORE the transpose so the
    # XLA relayout copy moves half the bytes.
    # TODO(synk): folding this (and the un-partition below) into the kernel would
    # save ~2 HBM passes but needs an in-kernel sublane relayout Mosaic handles
    # poorly for s_w % 8 != 0.
    xw = x.astype(jnp.bfloat16).reshape(N, w_h, s_h, w_w, s_w, C)
    xw = xw.transpose(0, 1, 3, 2, 4, 5).reshape(B * L, C)

    # --- relative position bias (heads, L, L): single grid-resident copy ---
    rpi = _relative_position_index(s_h, s_w)
    rel_bias = params["rel_pos_table"][rpi.reshape(-1)]
    rel_bias = rel_bias.reshape(L, L, num_heads).transpose(2, 0, 1).astype(jnp.float32)

    # --- fold 1/sqrt(head_dim) into the Q columns of the QKV projection ---
    scale = 1.0 / math.sqrt(head_dim)
    col_scale = jnp.concatenate(
        [jnp.full((C,), scale, jnp.float32), jnp.ones((2 * C,), jnp.float32)])
    wqkv_t = (params["w_qkv"].astype(jnp.float32).T * col_scale[None, :]).astype(jnp.bfloat16)
    bqkv = (params["b_qkv"].astype(jnp.float32) * col_scale).reshape(1, 3 * C)
    wout_t = params["w_out"].T.astype(jnp.bfloat16)                       # (C, C)
    bout = params["b_out"].astype(jnp.float32).reshape(1, C)

    has_mask = mask is not None

    in_specs = [
        pl.BlockSpec((rows, C), lambda i: (i, 0)),                   # x rows
        pl.BlockSpec((num_heads, L, L), lambda i: (0, 0, 0)),        # bias (resident)
    ]
    inputs = [xw, rel_bias]
    mask_in = None
    if has_mask:
        # Never broadcast the mask over the batch: keep it (nW, L, L) and index it
        # modularly, or tile it once to (TW, L, L) when TW spans whole images.
        mask_flat = mask.reshape(nW, L, L).astype(jnp.float32)
        if TW <= nW:
            n_blk = nW // TW
            mask_in = mask_flat
            in_specs.append(pl.BlockSpec((TW, L, L), lambda i: (i % n_blk, 0, 0)))
        else:
            mask_in = jnp.tile(mask_flat, (TW // nW, 1, 1))          # grid-resident
            in_specs.append(pl.BlockSpec((TW, L, L), lambda i: (0, 0, 0)))
        inputs.append(mask_in)
    in_specs += [
        pl.BlockSpec((C, 3 * C), lambda i: (0, 0)),
        pl.BlockSpec((1, 3 * C), lambda i: (0, 0)),
        pl.BlockSpec((C, C), lambda i: (0, 0)),
        pl.BlockSpec((1, C), lambda i: (0, 0)),
    ]
    inputs += [wqkv_t, bqkv, wout_t, bout]

    kernel = functools.partial(_wmsa_kernel, num_heads=num_heads,
                               head_dim=head_dim, win_len=L, has_mask=has_mask)

    # --- advisory cost estimate (helps XLA overlap the surrounding glue) ---
    flops = (2 * B * L * C * 3 * C                       # QKV projection
             + 4 * B * num_heads * L * L * head_dim      # QK^T and attn @ V
             + 2 * B * L * C * C)                        # output projection
    bytes_accessed = (xw.size * 2 + B * L * C * x.dtype.itemsize
                      + wqkv_t.size * 2 + wout_t.size * 2
                      + bqkv.size * 4 + bout.size * 4 + rel_bias.size * 4
                      + (mask_in.size * 4 if has_mask else 0))
    cost = pl.CostEstimate(flops=int(flops),
                           transcendentals=int(B * num_heads * L * L),
                           bytes_accessed=int(bytes_accessed))

    # --- explicit VMEM budget (v7x: 64 MiB physical / 32 MiB default scoped) ---
    est = (2 * rows * C * 2                              # x block (bf16), 2-buffered
           + 2 * rows * C * x.dtype.itemsize             # out block, 2-buffered
           + 2 * num_heads * L * L * 4                   # rel bias
           + (2 * rows * L * 4 if has_mask else 0)       # mask block
           + 2 * (C * 3 * C * 2 + 3 * C * 4 + C * C * 2 + C * 4)   # weights/biases
           + rows * 3 * C * 2 + rows * C * 2)            # qkv + ctx scratch
    vmem_limit = int(min(max(est + (8 << 20), 32 << 20), 64 << 20))

    out = pl.pallas_call(
        kernel,
        out_shape=jax.ShapeDtypeStruct((B * L, C), x.dtype),
        grid_spec=pltpu.PrefetchScalarGridSpec(
            num_scalar_prefetch=0,
            grid=(grid_len,),
            in_specs=in_specs,
            out_specs=pl.BlockSpec((rows, C), lambda i: (i, 0)),
            scratch_shapes=[pltpu.VMEM((rows, 3 * C), jnp.bfloat16),   # qkv scratch
                            pltpu.VMEM((rows, C), jnp.bfloat16)],      # ctx scratch
        ),
        compiler_params=pltpu.CompilerParams(
            dimension_semantics=("parallel",),
            vmem_limit_bytes=vmem_limit),
        cost_estimate=cost,
    )(*inputs)

    # --- window un-partition (host glue) ---
    y = out.reshape(N, w_h, w_w, s_h, s_w, C).transpose(0, 1, 3, 2, 4, 5)
    return y.reshape(N, H, W, C)


# -----------------------------------------------------------------------------
# Pure-JAX reference (mirrors the PyTorch forward, eval mode, f32 HIGHEST)
# -----------------------------------------------------------------------------
def reference(x, mask, params, *, window_shape, num_heads):
    P = jax.lax.Precision.HIGHEST
    N, H, W, C = x.shape
    s_h, s_w = window_shape
    w_h, w_w = H // s_h, W // s_w
    L = s_h * s_w
    hd = C // num_heads

    xp = jnp.matmul(x, params["w_qkv"].T, precision=P) + params["b_qkv"]
    xp = xp.reshape(N, w_h, s_h, w_w, s_w, 3, num_heads, hd)
    xp = xp.transpose(0, 1, 3, 5, 6, 2, 4, 7).reshape(N, w_h, w_w, 3, num_heads, L, hd)
    q, k, v = xp[:, :, :, 0], xp[:, :, :, 1], xp[:, :, :, 2]

    logits = jnp.einsum("nabhld,nabhmd->nabhlm", q, k, precision=P) / math.sqrt(hd)

    rpi = _relative_position_index(s_h, s_w)
    rel_bias = params["rel_pos_table"][rpi.reshape(-1)].reshape(L, L, num_heads)
    rel_bias = rel_bias.transpose(2, 0, 1)
    logits = logits + rel_bias
    if mask is not None:
        logits = logits + mask[:, :, None, :, :]
    atten = jax.nn.softmax(logits, axis=-1)

    out = jnp.einsum("nabhlm,nabhmd->nabhld", atten, v, precision=P)
    out = out.reshape(N, w_h, w_w, num_heads, s_h, s_w, hd)
    out = out.transpose(0, 1, 4, 2, 5, 3, 6).reshape(N, H, W, C)
    return jnp.matmul(out, params["w_out"].T, precision=P) + params["b_out"]


# -----------------------------------------------------------------------------
if __name__ == "__main__":
    N, H, W = 2, 8, 8
    embed_dim, num_heads = 32, 4
    window_shape = (4, 4)
    s_h, s_w = window_shape
    L = s_h * s_w
    w_h, w_w = H // s_h, W // s_w

    key = jax.random.PRNGKey(0)
    kx, km, k1, k2, k3, k4, k5 = jax.random.split(key, 7)

    x = jax.random.normal(kx, (N, H, W, embed_dim), dtype=jnp.float32)
    mask = 0.1 * jax.random.normal(km, (w_h, w_w, L, L), dtype=jnp.float32)

    n_rel = (2 * s_h - 1) * (2 * s_w - 1)
    params = {
        "w_qkv": 0.05 * jax.random.normal(k1, (3 * embed_dim, embed_dim), jnp.float32),
        "b_qkv": 0.05 * jax.random.normal(k2, (3 * embed_dim,), jnp.float32),
        "w_out": 0.05 * jax.random.normal(k3, (embed_dim, embed_dim), jnp.float32),
        "b_out": 0.05 * jax.random.normal(k4, (embed_dim,), jnp.float32),
        "rel_pos_table": 0.02 * jax.random.truncated_normal(
            k5, -2.0, 2.0, (n_rel, num_heads), jnp.float32),
    }

    # Exercise both the masked (shifted-window) and mask-free code paths.
    for m in (mask, None):
        y = windowed_mhsa(x, m, params, window_shape=window_shape, num_heads=num_heads)
        y = jax.block_until_ready(y)
        y_ref = reference(x, m, params, window_shape=window_shape, num_heads=num_heads)
        assert y.shape == (N, H, W, embed_dim)
        err = float(jnp.max(jnp.abs(y - y_ref)))
        # bf16 MXU math + approx reciprocal -> looser tolerance than f32 HIGHEST.
        assert jnp.allclose(y, y_ref, atol=2e-2, rtol=2e-2), err

    print("KERNEL_OK")
</pallas_src>

<mosaic_0001>
module attributes {stable_mosaic.version = 11 : i64} {
  func.func @_wmsa_kernel(%arg0: i32, %arg1: memref<64x32xbf16, #tpu.memory_space<vmem>>, %arg2: memref<4x16x16xf32, #tpu.memory_space<vmem>>, %arg3: memref<4x16x16xf32, #tpu.memory_space<vmem>>, %arg4: memref<32x96xbf16, #tpu.memory_space<vmem>>, %arg5: memref<1x96xf32, #tpu.memory_space<vmem>>, %arg6: memref<32x32xbf16, #tpu.memory_space<vmem>>, %arg7: memref<1x32xf32, #tpu.memory_space<vmem>>, %arg8: memref<64x32xf32, #tpu.memory_space<vmem>>, %arg9: memref<64x96xbf16, #tpu.memory_space<vmem>>, %arg10: memref<64x32xbf16, #tpu.memory_space<vmem>>) attributes {dimension_semantics = [#tpu.dimension_semantics<parallel>], iteration_bounds = array<i64: 2>, scalar_prefetch = 0 : i64, scratch_operands = 2 : i64, tpu.core_type = #tpu.core_type<tc>, window_params = [{transform_indices = @transform_0, window_bounds = array<i64: 64, 32>}, {pipeline_mode = #tpu.pipeline_mode<synchronous>, transform_indices = @transform_1, window_bounds = array<i64: 4, 16, 16>}, {transform_indices = @transform_2, window_bounds = array<i64: 4, 16, 16>}, {pipeline_mode = #tpu.pipeline_mode<synchronous>, transform_indices = @transform_3, window_bounds = array<i64: 32, 96>}, {pipeline_mode = #tpu.pipeline_mode<synchronous>, transform_indices = @transform_4, window_bounds = array<i64: 1, 96>}, {pipeline_mode = #tpu.pipeline_mode<synchronous>, transform_indices = @transform_5, window_bounds = array<i64: 32, 32>}, {pipeline_mode = #tpu.pipeline_mode<synchronous>, transform_indices = @transform_6, window_bounds = array<i64: 1, 32>}, {transform_indices = @transform_7, window_bounds = array<i64: 64, 32>}]} {
    %c0 = arith.constant 0 : index
    %c0_0 = arith.constant 0 : index
    %0 = vector.load %arg1[%c0, %c0_0] : memref<64x32xbf16, #tpu.memory_space<vmem>>, vector<64x32xbf16>
    %c0_1 = arith.constant 0 : index
    %c0_2 = arith.constant 0 : index
    %1 = vector.load %arg4[%c0_1, %c0_2] : memref<32x96xbf16, #tpu.memory_space<vmem>>, vector<32x96xbf16>
    %cst = arith.constant dense<0.000000e+00> : vector<64x96xf32>
    %2 = tpu.matmul %0, %1, %cst {dimension_numbers = #tpu.dot_dimension_numbers<[1], [0], [0], [1], [0, 0, 1, 1], [], []>} : vector<64x32xbf16>, vector<32x96xbf16>, vector<64x96xf32> -> vector<64x96xf32>
    %c0_3 = arith.constant 0 : index
    %c0_4 = arith.constant 0 : index
    %3 = vector.load %arg5[%c0_3, %c0_4] : memref<1x96xf32, #tpu.memory_space<vmem>>, vector<1x96xf32>
    %4 = vector.broadcast %3 : vector<1x96xf32> to vector<64x96xf32>
    %5 = arith.addf %2, %4 : vector<64x96xf32>
    %6 = arith.truncf %5 : vector<64x96xf32> to vector<64x96xbf16>
    %c0_5 = arith.constant 0 : index
    %c0_6 = arith.constant 0 : index
    %7 = vector.load %arg9[%c0_5, %c0_6] : memref<64x96xbf16, #tpu.memory_space<vmem>>, vector<64x96xbf16>
    tpu.vector_store %arg9[%c0_5, %c0_6], %6 {strides = array<i32>} : memref<64x96xbf16, #tpu.memory_space<vmem>>, vector<64x96xbf16>,
    %c0_7 = arith.constant 0 : index
    %c0_8 = arith.constant 0 : index
    %8 = vector.load %arg9[%c0_7, %c0_8] : memref<64x96xbf16, #tpu.memory_space<vmem>>, vector<64x8xbf16>
    %9 = vector.shape_cast %8 : vector<64x8xbf16> to vector<4x16x8xbf16>
    %c0_9 = arith.constant 0 : index
    %c32 = arith.constant 32 : index
    %10 = vector.load %arg9[%c0_9, %c32] : memref<64x96xbf16, #tpu.memory_space<vmem>>, vector<64x8xbf16>
    %11 = vector.shape_cast %10 : vector<64x8xbf16> to vector<4x16x8xbf16>
    %c0_10 = arith.constant 0 : index
    %c64 = arith.constant 64 : index
    %12 = vector.load %arg9[%c0_10, %c64] : memref<64x96xbf16, #tpu.memory_space<vmem>>, vector<64x8xbf16>
    %13 = vector.shape_cast %12 : vector<64x8xbf16> to vector<4x16x8xbf16>
    "tpu.trace_start"() <{level = 10 : i32, message = "wld,wmd->wlm"}> : () -> ()
    %cst_11 = arith.constant dense<0.000000e+00> : vector<4x16x16xf32>
    %14 = tpu.matmul %9, %11, %cst_11 {dimension_numbers = #tpu.dot_dimension_numbers<[2], [2], [1], [1], [0, 0, 0, 1, 1, 1], [0], [0]>} : vector<4x16x8xbf16>, vector<4x16x8xbf16>, vector<4x16x16xf32> -> vector<4x16x16xf32>
    "tpu.trace_stop"() : () -> ()
    %c0_12 = arith.constant 0 : index
    %c0_13 = arith.constant 0 : index
    %c0_14 = arith.constant 0 : index
    %15 = vector.load %arg2[%c0_12, %c0_13, %c0_14] : memref<4x16x16xf32, #tpu.memory_space<vmem>>, vector<1x16x16xf32>
    %16 = vector.shape_cast %15 : vector<1x16x16xf32> to vector<16x16xf32>
    %17 = vector.shape_cast %16 : vector<16x16xf32> to vector<1x16x16xf32>
    %18 = vector.broadcast %17 : vector<1x16x16xf32> to vector<4x16x16xf32>
    %19 = arith.addf %14, %18 : vector<4x16x16xf32>
    %c0_15 = arith.constant 0 : index
    %c0_16 = arith.constant 0 : index
    %c0_17 = arith.constant 0 : index
    %20 = vector.load %arg3[%c0_15, %c0_16, %c0_17] : memref<4x16x16xf32, #tpu.memory_space<vmem>>, vector<4x16x16xf32>
    %21 = arith.addf %19, %20 : vector<4x16x16xf32>
    %cst_18 = arith.constant dense<0xFF800000> : vector<4x16xf32>
    %22 = vector.multi_reduction <maximumf>, %21, %cst_18 [2] : vector<4x16x16xf32> to vector<4x16xf32>
    %23 = vector.shape_cast %22 : vector<4x16xf32> to vector<4x16x1xf32>
    %24 = vector.broadcast %23 : vector<4x16x1xf32> to vector<4x16x16xf32>
    %25 = arith.subf %21, %24 : vector<4x16x16xf32>
    %26 = math.exp %25 : vector<4x16x16xf32>
    %cst_19 = arith.constant dense<0.000000e+00> : vector<4x16xf32>
    %27 = vector.multi_reduction <add>, %26, %cst_19 [2] : vector<4x16x16xf32> to vector<4x16xf32>
    %28 = vector.shape_cast %27 : vector<4x16xf32> to vector<4x16x1xf32>
    %29 = tpu.reciprocal %28 {approx = true} : vector<4x16x1xf32> -> vector<4x16x1xf32>
    %30 = vector.broadcast %29 : vector<4x16x1xf32> to vector<4x16x16xf32>
    %31 = arith.mulf %26, %30 : vector<4x16x16xf32>
    %32 = arith.truncf %31 : vector<4x16x16xf32> to vector<4x16x16xbf16>
    "tpu.trace_start"() <{level = 10 : i32, message = "wlm,wmd->wld"}> : () -> ()
    %cst_20 = arith.constant dense<0.000000e+00> : vector<4x16x8xf32>
    %33 = tpu.matmul %32, %13, %cst_20 {dimension_numbers = #tpu.dot_dimension_numbers<[2], [1], [1], [2], [0, 0, 0, 1, 1, 2], [0], [0]>} : vector<4x16x16xbf16>, vector<4x16x8xbf16>, vector<4x16x8xf32> -> vector<4x16x8xf32>
    "tpu.trace_stop"() : () -> ()
    %34 = vector.shape_cast %33 : vector<4x16x8xf32> to vector<64x8xf32>
    %35 = arith.truncf %34 : vector<64x8xf32> to vector<64x8xbf16>
    %c0_21 = arith.constant 0 : index
    %c0_22 = arith.constant 0 : index
    %36 = vector.load %arg10[%c0_21, %c0_22] : memref<64x32xbf16, #tpu.memory_space<vmem>>, vector<64x8xbf16>
    tpu.vector_store %arg10[%c0_21, %c0_22], %35 {strides = array<i32>} : memref<64x32xbf16, #tpu.memory_space<vmem>>, vector<64x8xbf16>,
    %c0_23 = arith.constant 0 : index
    %c8 = arith.constant 8 : index
    %37 = vector.load %arg9[%c0_23, %c8] : memref<64x96xbf16, #tpu.memory_space<vmem>>, vector<64x8xbf16>
    %38 = vector.shape_cast %37 : vector<64x8xbf16> to vector<4x16x8xbf16>
    %c0_24 = arith.constant 0 : index
    %c40 = arith.constant 40 : index
    %39 = vector.load %arg9[%c0_24, %c40] : memref<64x96xbf16, #tpu.memory_space<vmem>>, vector<64x8xbf16>
    %40 = vector.shape_cast %39 : vector<64x8xbf16> to vector<4x16x8xbf16>
    %c0_25 = arith.constant 0 : index
    %c72 = arith.constant 72 : index
    %41 = vector.load %arg9[%c0_25, %c72] : memref<64x96xbf16, #tpu.memory_space<vmem>>, vector<64x8xbf16>
    %42 = vector.shape_cast %41 : vector<64x8xbf16> to vector<4x16x8xbf16>
    "tpu.trace_start"() <{level = 10 : i32, message = "wld,wmd->wlm"}> : () -> ()
    %cst_26 = arith.constant dense<0.000000e+00> : vector<4x16x16xf32>
    %43 = tpu.matmul %38, %40, %cst_26 {dimension_numbers = #tpu.dot_dimension_numbers<[2], [2], [1], [1], [0, 0, 0, 1, 1, 1], [0], [0]>} : vector<4x16x8xbf16>, vector<4x16x8xbf16>, vector<4x16x16xf32> -> vector<4x16x16xf32>
    "tpu.trace_stop"() : () -> ()
    %c1 = arith.constant 1 : index
    %c0_27 = arith.constant 0 : index
    %c0_28 = arith.constant 0 : index
    %44 = vector.load %arg2[%c1, %c0_27, %c0_28] : memref<4x16x16xf32, #tpu.memory_space<vmem>>, vector<1x16x16xf32>
    %45 = vector.shape_cast %44 : vector<1x16x16xf32> to vector<16x16xf32>
    %46 = vector.shape_cast %45 : vector<16x16xf32> to vector<1x16x16xf32>
    %47 = vector.broadcast %46 : vector<1x16x16xf32> to vector<4x16x16xf32>
    %48 = arith.addf %43, %47 : vector<4x16x16xf32>
    %c0_29 = arith.constant 0 : index
    %c0_30 = arith.constant 0 : index
    %c0_31 = arith.constant 0 : index
    %49 = vector.load %arg3[%c0_29, %c0_30, %c0_31] : memref<4x16x16xf32, #tpu.memory_space<vmem>>, vector<4x16x16xf32>
    %50 = arith.addf %48, %49 : vector<4x16x16xf32>
    %cst_32 = arith.constant dense<0xFF800000> : vector<4x16xf32>
    %51 = vector.multi_reduction <maximumf>, %50, %cst_32 [2] : vector<4x16x16xf32> to vector<4x16xf32>
    %52 = vector.shape_cast %51 : vector<4x16xf32> to vector<4x16x1xf32>
    %53 = vector.broadcast %52 : vector<4x16x1xf32> to vector<4x16x16xf32>
    %54 = arith.subf %50, %53 : vector<4x16x16xf32>
    %55 = math.exp %54 : vector<4x16x16xf32>
    %cst_33 = arith.constant dense<0.000000e+00> : vector<4x16xf32>
    %56 = vector.multi_reduction <add>, %55, %cst_33 [2] : vector<4x16x16xf32> to vector<4x16xf32>
    %57 = vector.shape_cast %56 : vector<4x16xf32> to vector<4x16x1xf32>
    %58 = tpu.reciprocal %57 {approx = true} : vector<4x16x1xf32> -> vector<4x16x1xf32>
    %59 = vector.broadcast %58 : vector<4x16x1xf32> to vector<4x16x16xf32>
    %60 = arith.mulf %55, %59 : vector<4x16x16xf32>
    %61 = arith.truncf %60 : vector<4x16x16xf32> to vector<4x16x16xbf16>
    "tpu.trace_start"() <{level = 10 : i32, message = "wlm,wmd->wld"}> : () -> ()
    %cst_34 = arith.constant dense<0.000000e+00> : vector<4x16x8xf32>
    %62 = tpu.matmul %61, %42, %cst_34 {dimension_numbers = #tpu.dot_dimension_numbers<[2], [1], [1], [2], [0, 0, 0, 1, 1, 2], [0], [0]>} : vector<4x16x16xbf16>, vector<4x16x8xbf16>, vector<4x16x8xf32> -> vector<4x16x8xf32>
    "tpu.trace_stop"() : () -> ()
    %63 = vector.shape_cast %62 : vector<4x16x8xf32> to vector<64x8xf32>
    %64 = arith.truncf %63 : vector<64x8xf32> to vector<64x8xbf16>
    %c0_35 = arith.constant 0 : index
    %c8_36 = arith.constant 8 : index
    %65 = vector.load %arg10[%c0_35, %c8_36] : memref<64x32xbf16, #tpu.memory_space<vmem>>, vector<64x8xbf16>
    tpu.vector_store %arg10[%c0_35, %c8_36], %64 {strides = array<i32>} : memref<64x32xbf16, #tpu.memory_space<vmem>>, vector<64x8xbf16>,
    %c0_37 = arith.constant 0 : index
    %c16 = arith.constant 16 : index
    %66 = vector.load %arg9[%c0_37, %c16] : memref<64x96xbf16, #tpu.memory_space<vmem>>, vector<64x8xbf16>
    %67 = vector.shape_cast %66 : vector<64x8xbf16> to vector<4x16x8xbf16>
    %c0_38 = arith.constant 0 : index
    %c48 = arith.constant 48 : index
    %68 = vector.load %arg9[%c0_38, %c48] : memref<64x96xbf16, #tpu.memory_space<vmem>>, vector<64x8xbf16>
    %69 = vector.shape_cast %68 : vector<64x8xbf16> to vector<4x16x8xbf16>
    %c0_39 = arith.constant 0 : index
    %c80 = arith.constant 80 : index
    %70 = vector.load %arg9[%c0_39, %c80] : memref<64x96xbf16, #tpu.memory_space<vmem>>, vector<64x8xbf16>
    %71 = vector.shape_cast %70 : vector<64x8xbf16> to vector<4x16x8xbf16>
    "tpu.trace_start"() <{level = 10 : i32, message = "wld,wmd->wlm"}> : () -> ()
    %cst_40 = arith.constant dense<0.000000e+00> : vector<4x16x16xf32>
    %72 = tpu.matmul %67, %69, %cst_40 {dimension_numbers = #tpu.dot_dimension_numbers<[2], [2], [1], [1], [0, 0, 0, 1, 1, 1], [0], [0]>} : vector<4x16x8xbf16>, vector<4x16x8xbf16>, vector<4x16x16xf32> -> vector<4x16x16xf32>
    "tpu.trace_stop"() : () -> ()
    %c2 = arith.constant 2 : index
    %c0_41 = arith.constant 0 : index
    %c0_42 = arith.constant 0 : index
    %73 = vector.load %arg2[%c2, %c0_41, %c0_42] : memref<4x16x16xf32, #tpu.memory_space<vmem>>, vector<1x16x16xf32>
    %74 = vector.shape_cast %73 : vector<1x16x16xf32> to vector<16x16xf32>
    %75 = vector.shape_cast %74 : vector<16x16xf32> to vector<1x16x16xf32>
    %76 = vector.broadcast %75 : vector<1x16x16xf32> to vector<4x16x16xf32>
    %77 = arith.addf %72, %76 : vector<4x16x16xf32>
    %c0_43 = arith.constant 0 : index
    %c0_44 = arith.constant 0 : index
    %c0_45 = arith.constant 0 : index
    %78 = vector.load %arg3[%c0_43, %c0_44, %c0_45] : memref<4x16x16xf32, #tpu.memory_space<vmem>>, vector<4x16x16xf32>
    %79 = arith.addf %77, %78 : vector<4x16x16xf32>
    %cst_46 = arith.constant dense<0xFF800000> : vector<4x16xf32>
    %80 = vector.multi_reduction <maximumf>, %79, %cst_46 [2] : vector<4x16x16xf32> to vector<4x16xf32>
    %81 = vector.shape_cast %80 : vector<4x16xf32> to vector<4x16x1xf32>
    %82 = vector.broadcast %81 : vector<4x16x1xf32> to vector<4x16x16xf32>
    %83 = arith.subf %79, %82 : vector<4x16x16xf32>
    %84 = math.exp %83 : vector<4x16x16xf32>
    %cst_47 = arith.constant dense<0.000000e+00> : vector<4x16xf32>
    %85 = vector.multi_reduction <add>, %84, %cst_47 [2] : vector<4x16x16xf32> to vector<4x16xf32>
    %86 = vector.shape_cast %85 : vector<4x16xf32> to vector<4x16x1xf32>
    %87 = tpu.reciprocal %86 {approx = true} : vector<4x16x1xf32> -> vector<4x16x1xf32>
    %88 = vector.broadcast %87 : vector<4x16x1xf32> to vector<4x16x16xf32>
    %89 = arith.mulf %84, %88 : vector<4x16x16xf32>
    %90 = arith.truncf %89 : vector<4x16x16xf32> to vector<4x16x16xbf16>
    "tpu.trace_start"() <{level = 10 : i32, message = "wlm,wmd->wld"}> : () -> ()
    %cst_48 = arith.constant dense<0.000000e+00> : vector<4x16x8xf32>
    %91 = tpu.matmul %90, %71, %cst_48 {dimension_numbers = #tpu.dot_dimension_numbers<[2], [1], [1], [2], [0, 0, 0, 1, 1, 2], [0], [0]>} : vector<4x16x16xbf16>, vector<4x16x8xbf16>, vector<4x16x8xf32> -> vector<4x16x8xf32>
    "tpu.trace_stop"() : () -> ()
    %92 = vector.shape_cast %91 : vector<4x16x8xf32> to vector<64x8xf32>
    %93 = arith.truncf %92 : vector<64x8xf32> to vector<64x8xbf16>
    %c0_49 = arith.constant 0 : index
    %c16_50 = arith.constant 16 : index
    %94 = vector.load %arg10[%c0_49, %c16_50] : memref<64x32xbf16, #tpu.memory_space<vmem>>, vector<64x8xbf16>
    tpu.vector_store %arg10[%c0_49, %c16_50], %93 {strides = array<i32>} : memref<64x32xbf16, #tpu.memory_space<vmem>>, vector<64x8xbf16>,
    %c0_51 = arith.constant 0 : index
    %c24 = arith.constant 24 : index
    %95 = vector.load %arg9[%c0_51, %c24] : memref<64x96xbf16, #tpu.memory_space<vmem>>, vector<64x8xbf16>
    %96 = vector.shape_cast %95 : vector<64x8xbf16> to vector<4x16x8xbf16>
    %c0_52 = arith.constant 0 : index
    %c56 = arith.constant 56 : index
    %97 = vector.load %arg9[%c0_52, %c56] : memref<64x96xbf16, #tpu.memory_space<vmem>>, vector<64x8xbf16>
    %98 = vector.shape_cast %97 : vector<64x8xbf16> to vector<4x16x8xbf16>
    %c0_53 = arith.constant 0 : index
    %c88 = arith.constant 88 : index
    %99 = vector.load %arg9[%c0_53, %c88] : memref<64x96xbf16, #tpu.memory_space<vmem>>, vector<64x8xbf16>
    %100 = vector.shape_cast %99 : vector<64x8xbf16> to vector<4x16x8xbf16>
    "tpu.trace_start"() <{level = 10 : i32, message = "wld,wmd->wlm"}> : () -> ()
    %cst_54 = arith.constant dense<0.000000e+00> : vector<4x16x16xf32>
    %101 = tpu.matmul %96, %98, %cst_54 {dimension_numbers = #tpu.dot_dimension_numbers<[2], [2], [1], [1], [0, 0, 0, 1, 1, 1], [0], [0]>} : vector<4x16x8xbf16>, vector<4x16x8xbf16>, vector<4x16x16xf32> -> vector<4x16x16xf32>
    "tpu.trace_stop"() : () -> ()
    %c3 = arith.constant 3 : index
    %c0_55 = arith.constant 0 : index
    %c0_56 = arith.constant 0 : index
    %102 = vector.load %arg2[%c3, %c0_55, %c0_56] : memref<4x16x16xf32, #tpu.memory_space<vmem>>, vector<1x16x16xf32>
    %103 = vector.shape_cast %102 : vector<1x16x16xf32> to vector<16x16xf32>
    %104 = vector.shape_cast %103 : vector<16x16xf32> to vector<1x16x16xf32>
    %105 = vector.broadcast %104 : vector<1x16x16xf32> to vector<4x16x16xf32>
    %106 = arith.addf %101, %105 : vector<4x16x16xf32>
    %c0_57 = arith.constant 0 : index
    %c0_58 = arith.constant 0 : index
    %c0_59 = arith.constant 0 : index
    %107 = vector.load %arg3[%c0_57, %c0_58, %c0_59] : memref<4x16x16xf32, #tpu.memory_space<vmem>>, vector<4x16x16xf32>
    %108 = arith.addf %106, %107 : vector<4x16x16xf32>
    %cst_60 = arith.constant dense<0xFF800000> : vector<4x16xf32>
    %109 = vector.multi_reduction <maximumf>, %108, %cst_60 [2] : vector<4x16x16xf32> to vector<4x16xf32>
    %110 = vector.shape_cast %109 : vector<4x16xf32> to vector<4x16x1xf32>
    %111 = vector.broadcast %110 : vector<4x16x1xf32> to vector<4x16x16xf32>
    %112 = arith.subf %108, %111 : vector<4x16x16xf32>
    %113 = math.exp %112 : vector<4x16x16xf32>
    %cst_61 = arith.constant dense<0.000000e+00> : vector<4x16xf32>
    %114 = vector.multi_reduction <add>, %113, %cst_61 [2] : vector<4x16x16xf32> to vector<4x16xf32>
    %115 = vector.shape_cast %114 : vector<4x16xf32> to vector<4x16x1xf32>
    %116 = tpu.reciprocal %115 {approx = true} : vector<4x16x1xf32> -> vector<4x16x1xf32>
    %117 = vector.broadcast %116 : vector<4x16x1xf32> to vector<4x16x16xf32>
    %118 = arith.mulf %113, %117 : vector<4x16x16xf32>
    %119 = arith.truncf %118 : vector<4x16x16xf32> to vector<4x16x16xbf16>
    "tpu.trace_start"() <{level = 10 : i32, message = "wlm,wmd->wld"}> : () -> ()
    %cst_62 = arith.constant dense<0.000000e+00> : vector<4x16x8xf32>
    %120 = tpu.matmul %119, %100, %cst_62 {dimension_numbers = #tpu.dot_dimension_numbers<[2], [1], [1], [2], [0, 0, 0, 1, 1, 2], [0], [0]>} : vector<4x16x16xbf16>, vector<4x16x8xbf16>, vector<4x16x8xf32> -> vector<4x16x8xf32>
    "tpu.trace_stop"() : () -> ()
    %121 = vector.shape_cast %120 : vector<4x16x8xf32> to vector<64x8xf32>
    %122 = arith.truncf %121 : vector<64x8xf32> to vector<64x8xbf16>
    %c0_63 = arith.constant 0 : index
    %c24_64 = arith.constant 24 : index
    %123 = vector.load %arg10[%c0_63, %c24_64] : memref<64x32xbf16, #tpu.memory_space<vmem>>, vector<64x8xbf16>
    tpu.vector_store %arg10[%c0_63, %c24_64], %122 {strides = array<i32>} : memref<64x32xbf16, #tpu.memory_space<vmem>>, vector<64x8xbf16>,
    %c0_65 = arith.constant 0 : index
    %c0_66 = arith.constant 0 : index
    %124 = vector.load %arg10[%c0_65, %c0_66] : memref<64x32xbf16, #tpu.memory_space<vmem>>, vector<64x32xbf16>
    %c0_67 = arith.constant 0 : index
    %c0_68 = arith.constant 0 : index
    %125 = vector.load %arg6[%c0_67, %c0_68] : memref<32x32xbf16, #tpu.memory_space<vmem>>, vector<32x32xbf16>
    %cst_69 = arith.constant dense<0.000000e+00> : vector<64x32xf32>
    %126 = tpu.matmul %124, %125, %cst_69 {dimension_numbers = #tpu.dot_dimension_numbers<[1], [0], [0], [1], [0, 0, 1, 1], [], []>} : vector<64x32xbf16>, vector<32x32xbf16>, vector<64x32xf32> -> vector<64x32xf32>
    %c0_70 = arith.constant 0 : index
    %c0_71 = arith.constant 0 : index
    %127 = vector.load %arg7[%c0_70, %c0_71] : memref<1x32xf32, #tpu.memory_space<vmem>>, vector<1x32xf32>
    %128 = vector.broadcast %127 : vector<1x32xf32> to vector<64x32xf32>
    %129 = arith.addf %126, %128 : vector<64x32xf32>
    %c0_72 = arith.constant 0 : index
    %c0_73 = arith.constant 0 : index
    %130 = vector.load %arg8[%c0_72, %c0_73] : memref<64x32xf32, #tpu.memory_space<vmem>>, vector<64x32xf32>
    tpu.vector_store %arg8[%c0_72, %c0_73], %129 {strides = array<i32>} : memref<64x32xf32, #tpu.memory_space<vmem>>, vector<64x32xf32>,
    return
  }
  func.func @transform_0(%arg0: i32) -> (i32, i32) {
    %c0_i32 = arith.constant 0 : i32
    %c0_i32_0 = arith.constant 0 : i32
    return %arg0, %c0_i32 : i32, i32
  }
  func.func @transform_1(%arg0: i32) -> (i32, i32, i32) {
    %c0_i32 = arith.constant 0 : i32
    %c0_i32_0 = arith.constant 0 : i32
    %c0_i32_1 = arith.constant 0 : i32
    %c0_i32_2 = arith.constant 0 : i32
    return %c0_i32, %c0_i32_0, %c0_i32_1 : i32, i32, i32
  }
  func.func @transform_2(%arg0: i32) -> (i32, i32, i32) {
    %c1_i32 = arith.constant 1 : i32
    %c0_i32 = arith.constant 0 : i32
    %0 = arith.cmpi eq, %c1_i32, %c0_i32 : i32
    %c1_i32_0 = arith.constant 1 : i32
    %1 = arith.select %0, %c1_i32_0, %c1_i32 : i32
    %2 = arith.remsi %arg0, %1 : i32
    %c0_i32_1 = arith.constant 0 : i32
    %3 = arith.cmpi ne, %2, %c0_i32_1 : i32
    %c0_i32_2 = arith.constant 0 : i32
    %4 = arith.cmpi slt, %2, %c0_i32_2 : i32
    %c0_i32_3 = arith.constant 0 : i32
    %5 = arith.cmpi slt, %1, %c0_i32_3 : i32
    %6 = arith.xori %4, %5 : i1
    %7 = arith.andi %6, %3 : i1
    %8 = arith.addi %2, %1 : i32
    %9 = arith.select %7, %8, %2 : i32
    %c0_i32_4 = arith.constant 0 : i32
    %c0_i32_5 = arith.constant 0 : i32
    %c0_i32_6 = arith.constant 0 : i32
    return %9, %c0_i32_4, %c0_i32_5 : i32, i32, i32
  }
  func.func @transform_3(%arg0: i32) -> (i32, i32) {
    %c0_i32 = arith.constant 0 : i32
    %c0_i32_0 = arith.constant 0 : i32
    %c0_i32_1 = arith.constant 0 : i32
    return %c0_i32, %c0_i32_0 : i32, i32
  }
  func.func @transform_4(%arg0: i32) -> (i32, i32) {
    %c0_i32 = arith.constant 0 : i32
    %c0_i32_0 = arith.constant 0 : i32
    %c0_i32_1 = arith.constant 0 : i32
    return %c0_i32, %c0_i32_0 : i32, i32
  }
  func.func @transform_5(%arg0: i32) -> (i32, i32) {
    %c0_i32 = arith.constant 0 : i32
    %c0_i32_0 = arith.constant 0 : i32
    %c0_i32_1 = arith.constant 0 : i32
    return %c0_i32, %c0_i32_0 : i32, i32
  }
  func.func @transform_6(%arg0: i32) -> (i32, i32) {
    %c0_i32 = arith.constant 0 : i32
    %c0_i32_0 = arith.constant 0 : i32
    %c0_i32_1 = arith.constant 0 : i32
    return %c0_i32, %c0_i32_0 : i32, i32
  }
  func.func @transform_7(%arg0: i32) -> (i32, i32) {
    %c0_i32 = arith.constant 0 : i32
    %c0_i32_0 = arith.constant 0 : i32
    return %arg0, %c0_i32 : i32, i32
  }
}

</mosaic_0001>

<bundles_post_ra>
// kernel: tpu_custom_call.1
= control target key start
LH: loop header
LB: loop body
LE: loop exit
PB: predicated region body
PF: predicated region fallthrough
CT: control target
= control target key end

     0   :  { %12 = vsyncpa [#allocation5], 0  ;;  %s3288_s0 = inlined_call_operand.vmem [shape: bf16[128,32], index: 0, kind: input, shape index: {}]   ;;  %s3289_s1 = inlined_call_operand.vmem [shape: f32[4,16,16], index: 1, kind: input, shape index: {}]   ;;  %s3290_s2 = inlined_call_operand.hbm [shape: f32[4,16,16], index: 2, kind: input, shape index: {}]   ;;  %s3291_s3 = inlined_call_operand.vmem [shape: bf16[32,96], index: 3, kind: input, shape index: {}]   ;;  %s3292_s4 = inlined_call_operand.vmem [shape: f32[1,96], index: 4, kind: input, shape index: {}]   ;;  %s3293_s5 = inlined_call_operand.hbm [shape: bf16[32,32], index: 5, kind: input, shape index: {}]   ;;  %s3294_s6 = inlined_call_operand.vmem [shape: f32[1,32], index: 6, kind: input, shape index: {}]   ;;  %s3295_s7 = inlined_call_operand.vmem [shape: f32[128,32], index: 7, kind: output, shape index: {}]  }
   0x1   :  { %13 = vsyncpa [#allocation7], 0  ;;  %s2632_s24 = smov 0  }
   0x2 LB: > { %s216_s27 = sshll.u32 %s3290_s2, 4  ;;  %s2112_s28 = sadd.s32 4294967295, %s2570_s24   ;;  %s2570_s24 = sphi %s2632_s24, %s19_s24   ;;  %s217_s27 = int_to_ptr.hbm [resolvable:$true] %s216_s27 }
   0x3   : > { %p2114_p0 = scmp.ge.s32.totalorder %s2570_s24, 1  ;;  %p202_p1 = scmp.lt.s32.totalorder %s2570_s24, 3 }
   0x4   : > { %p2643_p2 = scmp.eq.s32.totalorder %s2112_s28, 0  ;;  %s2572_s8 = smov [#allocation4]  }
   0x5   : > { %p2647_p3 = pnand %p2114_p0, %p202_p1  ;;  %s218_s9 = sshll.u32 %s2572_s8, 4  ;;  %s219_s9 = int_to_ptr.vmem [resolvable:$true] %s218_s9 }
   0x6   : > { %s236_s12 = sshll.u32 %s3293_s5, 4  ;;  %s2573_s13 = smov [#allocation6]   ;;  %s237_s12 = int_to_ptr.hbm [resolvable:$true] %s236_s12 }
   0x7   : > { %p2327_p4 = pneg %p2647_p3  ;;  %s238_s14 = sshll.u32 %s2573_s13, 4  ;;  %s239_s14 = int_to_ptr.vmem [resolvable:$true] %s238_s14 }
   0x8   : > { %s2574_s15 = smov 128   ;;  %s2575_s16 = smov 8  }
   0x9   : > { %p2328_p5 = pnand %p2643_p2, %p2327_p4  ;;  %s2576_s17 = smov 64  }
   0xa   : > { %s2577_s18 = smov 4   ;;  %266 = sbr.rel (%p2647_p3) target bundleno = 2565 (0xa05), region = 48 }
   0xb   : > { %2330 = dma.hbm_to_vmem [thread:$0]  (!%p2328_p5), %s217_s27, 1024, %s219_s9, [#allocation5], %s2574_s15, %s2574_s15, %s2575_s16  }
   0xc   : > { %2333 = dma.hbm_to_vmem [thread:$0]  (!%p2328_p5), %s237_s12, 256, %s239_s14, [#allocation7], %s2576_s17, %s2576_s17, %s2577_s18  }
   0xf   : > { %2561 = dma.done.wait (%p2643_p2), [#allocation5], 1024  }
  0x10   : > { %2563 = vsyncadd (%p2643_p2), [#allocation5], 4294966272 }
  0x11   : > { %2565 = dma.done.wait (%p2643_p2), [#allocation7], 256  }
  0x12   : > { %2567 = vsyncadd (%p2643_p2), [#allocation7], 4294967040  ;;  %s2121_s19 = sshll.u32 %s2112_s28, 3  ;;  %v2290_v0 = vld [vmem:[%s3291_s3 + $0x8] sm:$0xff]  ;;  %v2289_v1 = vld [vmem:[%s3291_s3] sm:$0xff]  ;;  %vm365_vm0 = vcmask 261120  }
  0x13   : > { %p305_p6 = scmp.lt.s32.totalorder %s2121_s19, 15  ;;  %2313 = vmatpush.bf16.msra.mxu1 %v2290_v0  ;;  %2315 = vmatpush.bf16.msra.mxu3 %v2290_v0  ;;  %v2366_v6 = vld [vmem:[%s3292_s4] ss:$0 sm:$0xff]  ;;  %vm415_vm1 = vcmask 781312   ;;  %s2578_s8 = smov 96   ;;  %vm441_vm2 = vcmask 64512  }
  0x14   : > { %384 = vmatpush.bf16.msra.mxu0 %v2290_v0  ;;  %2314 = vmatpush.bf16.msra.mxu2 %v2290_v0  ;;  %s2579_s9 = smov 64   ;;  %v432_v44 = vld [vmem:[%s3289_s1] sm:$0xff]  ;;  %v2719_v46 = vld [vmem:[#allocation4 + $0x10] sm:$0xff]  ;;  %vm559_vm3 = vcmask 130048   ;;  %v433_v54 = vld [vmem:[%s3289_s1 + $0x8] sm:$0xff]  ;;  %s2580_s14 = smov 88  }
  0x15   : > { %s3299_s19 = smov (!%p305_p6, %s2121_s19), 15  ;;  %v2721_v49 = vld [vmem:[#allocation4] sm:$0xff]  ;;  %v2730_v57 = vld [vmem:[#allocation4 + $0x18] sm:$0xff]  ;;  %v2732_v60 = vld [vmem:[#allocation4 + $0x8] sm:$0xff]  ;;  %s2581_s15 = smov 120   ;;  %vm764_vm4 = vcmask 60416  }
  0x16   : > { %s2122_s20 = sshll.u32 %s3299_s19, 2  ;;  %s2582_s16 = smov 56   ;;  %vm1152_vm5 = vcmask 126016   ;;  %vm1540_vm6 = vcmask 191616   ;;  %vm1928_vm7 = vcmask 257216  }
  0x17   : > { %s308_s29 = scalar_lea.vmem %s3288_s0, %s2122_s20  ;;  %2316 = vmatpush.bf16.msra.mxu1 %v2289_v1  ;;  %2318 = vmatpush.bf16.msra.mxu3 %v2289_v1  ;;  %s2583_s22 = smov 80  }
  0x18   : > { %v2286_v2 = vld [vmem:[%s308_s29 + $0x8] sm:$0xff]  ;;  %v2288_v3 = vld [vmem:[%s308_s29 + $0x18] sm:$0xff]  ;;  %v2285_v4 = vld [vmem:[%s308_s29] sm:$0xff]  ;;  %385 = vmatpush.bf16.msra.mxu0 %v2289_v1  ;;  %2317 = vmatpush.bf16.msra.mxu2 %v2289_v1  ;;  %s2584_s23 = smov 112   ;;  %s2585_s25 = smov 48  }
  0x19   : > { %v2287_v5 = vld [vmem:[%s308_s29 + $0x10] sm:$0xff]  ;;  %s2586_s30 = smov 104   ;;  %s2588_s13 = smov 40  }
  0x1a   : > { %2150 = vmatmul.msk.bf16.vlgmr.msra.gmra.mxu1 %vm365_vm0, %v2286_v2  ;;  %2152 = vmatmul.msk.bf16.vlgmr.msra.gmra.mxu3 %vm365_vm0, %v2288_v3  ;;  %s2124_s17 = sshll.u32 %s3299_s19, 3 }
  0x1b   : > { %2149 = vmatmul.msk.bf16.vlgmr.msra.gmra.mxu0 %vm365_vm0, %v2285_v4  ;;  %2151 = vmatmul.msk.bf16.vlgmr.msra.gmra.mxu2 %vm365_vm0, %v2287_v5  ;;  %v2741_v4 = vld [vmem:[#allocation4 + $0x20] sm:$0xff] }
  0x97   : > { %v392_v7 = vpop.f32.mrf.mxu1 }
  0x98   : > { %v393_v8 = vadd.f32 %v2366_v6, %v392_v7  ;;  %v387_v9 = vpop.f32.mrf.mxu0 }
  0x99   : > { %v388_v10 = vadd.f32 %v2366_v6, %v387_v9  ;;  %v2745_v9 = vld [vmem:[#allocation4 + $0x30] sm:$0xff] }
  0x9a   : > { %v409_v11 = vpack.c.bf16 %v393_v8, %v393_v8 }
  0x9b   : > { %v407_v12 = vpack.c.bf16 %v388_v10, %v388_v10 }
  0x9c   : > { %418 = vst.msk [vmem:[#allocation2 + $0x8] sm:$0xf] %vm415_vm1, %v409_v11 }
  0x9d   : > { %v402_v13 = vpop.f32.mrf.mxu3  ;;  %416 = vst.msk [vmem:[#allocation2] sm:$0xf] %vm415_vm1, %v407_v12 }
  0x9e   : > { %v403_v14 = vadd.f32 %v2366_v6, %v402_v13  ;;  %v397_v15 = vpop.f32.mrf.mxu2 }
  0x9f   : > { %v394_v16 = vpop.f32.mrf.mxu1  ;;  %v398_v17 = vadd.f32 %v2366_v6, %v397_v15 }
  0xa0   : > { %v413_v18 = vpack.c.bf16 %v403_v14, %v403_v14  ;;  %v395_v19 = vadd.f32 %v2366_v6, %v394_v16  ;;  %v389_v20 = vpop.f32.mrf.mxu0  ;;  %v2749_v14 = vld [vmem:[#allocation4 + $0x28] sm:$0xff] }
  0xa1   : > { %v411_v21 = vpack.c.bf16 %v398_v17, %v398_v17  ;;  %v390_v22 = vadd.f32 %v2366_v6, %v389_v20 }
  0xa2   : > { %422 = vst.msk [vmem:[#allocation2 + $0x18] sm:$0xf] %vm415_vm1, %v413_v18  ;;  %v410_v23 = vpack.c.bf16 %v395_v19, %v395_v19  ;;  %v2758_v19 = vld [vmem:[#allocation4 + $0x38] sm:$0xff] }
  0xa3   : > { %420 = vst.msk [vmem:[#allocation2 + $0x10] sm:$0xf] %vm415_vm1, %v411_v21  ;;  %v408_v24 = vpack.c.bf16 %v390_v22, %v390_v22 }
  0xa4   : > { %419 = vst.msk [vmem:[#allocation2 + $0xc] sm:$0xf] %vm415_vm1, %v410_v23 }
  0xa5   : > { %v404_v25 = vpop.f32.mrf.mxu3  ;;  %417 = vst.msk [vmem:[#allocation2 + $0x4] sm:$0xf] %vm415_vm1, %v408_v24 }
  0xa6   : > { %v405_v26 = vadd.f32 %v2366_v6, %v404_v25  ;;  %v399_v27 = vpop.f32.mrf.mxu2 }
  0xa7   : > { %v400_v28 = vadd.f32 %v2366_v6, %v399_v27 }
  0xa8   : > { %v414_v29 = vpack.c.bf16 %v405_v26, %v405_v26 }
  0xa9   : > { %v412_v30 = vpack.c.bf16 %v400_v28, %v400_v28 }
  0xaa   : > { %423 = vst.msk [vmem:[#allocation2 + $0x1c] sm:$0xf] %vm415_vm1, %v414_v29 }
  0xab   : > { %421 = vst.msk [vmem:[#allocation2 + $0x14] sm:$0xf] %vm415_vm1, %v412_v30  ;;  %v2695_v31 = vld [vmem:[#allocation2 + $0x8] sm:$0xff] }
  0xac   : > { %v2291_v32 = vld [vmem:[#allocation2] sm:$0xff]  ;;  %467 = vrot.lane.b32.xlu0 %v2695_v31, %s2578_s8  ;;  %v2761_v21 = vld [vmem:[#allocation2 + $0x8] sm:$0xff] }
  0xad   : > { %661 = vrot.lane.b32.xlu2 %v2291_v32, %s2579_s9 }
  0xb1   : > { %v2699_v33 = vld [vmem:[#allocation2 + $0x18] sm:$0xff] }
  0xb2   : > { %521 = vrot.lane.b32.xlu1 %v2699_v33, %s2578_s8  ;;  %v2702_v34 = vld [vmem:[#allocation2 + $0x10] sm:$0xff] }
  0xb4   : > { %439 = vrot.lane.b32.xlu0 %v2291_v32, %s2578_s8 }
  0xba   : > { %494 = vrot.lane.b32.xlu1 %v2702_v34, %s2578_s8  ;;  %s2587_s8 = smov 72  }
 0x107   : > { %v662_v36 = vpop.permute.xlu2 %661 }
 0x11e   : > { %v468_v35 = vpop.permute.xlu0 %467 }
 0x11f   : > { %v473_v37 = vsel %vm441_vm2, %v468_v35, 0 }
 0x120   : > { %482 = vmatpush.bf16.xpose.msrb.mxu2 %v473_v37 }
 0x124   : > { %v522_v38 = vpop.permute.xlu1 %521 }
 0x125   : > { %v527_v39 = vsel %vm441_vm2, %v522_v38, 0 }
 0x126   : > { %v440_v40 = vpop.permute.xlu0 %439 }
 0x127   : > { %2162 = vmatmul.msk.bf16.vlgmr.msrb.gmra.mxu2 %vm441_vm2, %v2695_v31  ;;  %v446_v41 = vsel %vm441_vm2, %v440_v40, 0 }
 0x128   : > { %674 = vmatpush.bf16.msra.mxu2 %v662_v36  ;;  %455 = vmatpush.bf16.xpose.msrb.mxu1 %v446_v41 }
 0x12c   : > { %v495_v42 = vpop.permute.xlu1 %494 }
 0x12d   : > { %v500_v43 = vsel %vm441_vm2, %v495_v42, 0 }
 0x12e   : > { %509 = vmatpush.bf16.xpose.msrb.mxu3 %v500_v43 }
 0x12f   : > { %2157 = vmatmul.msk.bf16.vlgmr.msrb.gmra.mxu1 %vm441_vm2, %v2291_v32 }
 0x130   : > { %536 = vmatpush.bf16.xpose.msra.mxu1 %v527_v39 }
 0x135   : > { %2167 = vmatmul.msk.bf16.vlgmr.msrb.gmra.mxu3 %vm441_vm2, %v2702_v34 }
 0x13f   : > { %2172 = vmatmul.msk.bf16.vlgmr.msra.gmra.mxu1 %vm441_vm2, %v2699_v33 }
 0x1aa   : > { %v484_v45 = vpop.f32.mrf.mxu2 }
 0x1ab   : > { %v485_v47 = vadd.f32 %v484_v45, %v432_v44 }
 0x1ac   : > { %v457_v48 = vpop.f32.mrf.mxu1 }
 0x1ad   : > { %v458_v50 = vadd.f32 %v457_v48, %v432_v44  ;;  %v553_v51 = vadd.f32 %v2719_v46, %v485_v47 }
 0x1af   : > { %v566_v52 = vsel %vm559_vm3, %v553_v51, -inf  ;;  %v551_v53 = vadd.f32 %v2721_v49, %v458_v50 }
 0x1b0   : > { %567 = vmax.xlane.f32.xlu0 %v566_v52  ;;  %v2295_v52 = vld [vmem:[#allocation2] sm:$0xff] }
 0x1b1   : > { %v560_v55 = vsel %vm559_vm3, %v551_v53, -inf }
 0x1b2   : > { %v486_v56 = vpop.f32.mrf.mxu2  ;;  %561 = vmax.xlane.f32.xlu2 %v560_v55 }
 0x1b3   : > { %v487_v58 = vadd.f32 %v486_v56, %v433_v54 }
 0x1b4   : > { %v459_v59 = vpop.f32.mrf.mxu1 }
 0x1b5   : > { %v460_v61 = vadd.f32 %v459_v59, %v433_v54  ;;  %v554_v62 = vadd.f32 %v2730_v57, %v487_v58 }
 0x1b7   : > { %v569_v63 = vsel %vm559_vm3, %v554_v62, -inf  ;;  %v2737_v0 = vadd.f32 %v2732_v60, %v460_v61 }
 0x1b8   : > { %v511_v1 = vpop.f32.mrf.mxu3  ;;  %570 = vmax.xlane.f32.xlu1 %v569_v63 }
 0x1b9   : > { %v512_v2 = vadd.f32 %v511_v1, %v432_v44  ;;  %v563_v3 = vsel %vm559_vm3, %v2737_v0, -inf }
 0x1ba   : > { %564 = vmax.xlane.f32.xlu2 %v563_v3 }
 0x1bb   : > { %v555_v5 = vadd.f32 %v2741_v4, %v512_v2 }
 0x1bc   : > { %v538_v6 = vpop.f32.mrf.mxu1 }
 0x1bd   : > { %v539_v7 = vadd.f32 %v538_v6, %v432_v44  ;;  %v572_v8 = vsel %vm559_vm3, %v555_v5, -inf }
 0x1bf   : > { %v557_v10 = vadd.f32 %v2745_v9, %v539_v7 }
 0x1c0   : > { %v513_v11 = vpop.f32.mrf.mxu3 }
 0x1c1   : > { %v514_v12 = vadd.f32 %v513_v11, %v433_v54  ;;  %v578_v13 = vsel %vm559_vm3, %v557_v10, -inf }
 0x1c2   : > { %573 = vmax.xlane.f32.xlu2 %v572_v8  ;;  %v2805_v8 = vld [vmem:[#allocation2 + $0x10] sm:$0xff] }
 0x1c3   : > { %v2752_v15 = vadd.f32 %v2749_v14, %v514_v12 }
 0x1c4   : > { %v540_v16 = vpop.f32.mrf.mxu1 }
 0x1c5   : > { %v541_v17 = vadd.f32 %v540_v16, %v433_v54  ;;  %v575_v18 = vsel %vm559_vm3, %v2752_v15, -inf }
 0x1c7   : > { %v558_v20 = vadd.f32 %v2758_v19, %v541_v17 }
 0x1c9   : > { %v581_v22 = vsel %vm559_vm3, %v558_v20, -inf }
 0x1ca   : > { %579 = vmax.xlane.f32.xlu2 %v578_v13 }
 0x1d1   : > { %736 = vrot.lane.b32.xlu1 %v2699_v33, %s2579_s9 }
 0x1d2   : > { %576 = vmax.xlane.f32.xlu2 %v575_v18 }
 0x1d9   : > { %820 = vrot.lane.b32.xlu1 %v2761_v21, %s2580_s14 }
 0x1da   : > { %582 = vmax.xlane.f32.xlu2 %v581_v22 }
 0x223   : > { %v568_v23 = vpop.xlane.xlu0 %567 }
 0x224   : > { %v586_v24 = vsub.f32 %v553_v51, %v568_v23 }
 0x225   : > { %v562_v25 = vpop.xlane.xlu2 %561 }
 0x226   : > { %v596_v26 = vmul.f32 1.442695, %v586_v24  ;;  %v584_v27 = vsub.f32 %v551_v53, %v562_v25 }
 0x228   : > { %2368 = vpow2.f32 %v596_v26  ;;  %v592_v28 = vmul.f32 1.442695, %v584_v27 }
 0x22a   : > { %2370 = vpow2.f32 %v592_v28 }
 0x22b   : > { %v571_v36 = vpop.xlane.xlu1 %570 }
 0x22c   : > { %v587_v39 = vsub.f32 %v554_v62, %v571_v36 }
 0x22d   : > { %v565_v29 = vpop.xlane.xlu2 %564 }
 0x22e   : > { %v2766_v30 = vpop.eup %2368  ;;  %v598_v41 = vmul.f32 1.442695, %v587_v39  ;;  %v585_v3 = vsub.f32 %v2737_v0, %v565_v29 }
 0x22f   : > { %v614_v32 = vsel %vm559_vm3, %v2766_v30, 0.0 }
 0x230   : > { %v2770_v33 = vpop.eup %2370  ;;  %615 = vadd.xlane.f32.xlu0 %v614_v32 }
 0x231   : > { %v608_v35 = vsel %vm559_vm3, %v2770_v33, 0.0 }
 0x232   : > { %609 = vadd.xlane.f32.xlu2 %v608_v35 }
 0x235   : > { %v574_v37 = vpop.xlane.xlu2 %573 }
 0x236   : > { %v588_v38 = vsub.f32 %v555_v5, %v574_v37  ;;  %v594_v5 = vmul.f32 1.442695, %v585_v3 }
 0x238   : > { %v600_v40 = vmul.f32 1.442695, %v588_v38 }
 0x23a   : > { %2372 = vpow2.f32 %v600_v40 }
 0x23b   : > { %2374 = vpow2.f32 %v598_v41 }
 0x23d   : > { %v580_v42 = vpop.xlane.xlu2 %579 }
 0x23e   : > { %v590_v44 = vsub.f32 %v557_v10, %v580_v42 }
 0x240   : > { %v2774_v43 = vpop.eup %2372  ;;  %v604_v48 = vmul.f32 1.442695, %v590_v44 }
 0x241   : > { %v620_v45 = vsel %vm559_vm3, %v2774_v43, 0.0  ;;  %v2375_v51 = vpop.eup %2374 }
 0x242   : > { %621 = vadd.xlane.f32.xlu1 %v620_v45  ;;  %2376 = vpow2.f32 %v604_v48  ;;  %v617_v53 = vsel %vm559_vm3, %v2375_v51, 0.0 }
 0x243   : > { %v737_v47 = vpop.permute.xlu1 %736 }
 0x244   : > { %749 = vmatpush.bf16.msrb.mxu2 %v737_v47  ;;  %686 = vrot.lane.b32.xlu0 %v2695_v31, %s2579_s9 }
 0x245   : > { %v577_v50 = vpop.xlane.xlu2 %576 }
 0x246   : > { %v589_v62 = vsub.f32 %v2752_v15, %v577_v50 }
 0x248   : > { %v2782_v55 = vpop.eup %2376  ;;  %v602_v63 = vmul.f32 1.442695, %v589_v62 }
 0x249   : > { %v626_v59 = vsel %vm559_vm3, %v2782_v55, 0.0 }
 0x24a   : > { %791 = vrot.lane.b32.xlu2 %v2295_v52, %s2580_s14  ;;  %618 = vadd.xlane.f32.xlu1 %v617_v53 }
 0x24b   : > { %v821_v10 = vpop.permute.xlu1 %820 }
 0x24c   : > { %v826_v23 = vsel %vm441_vm2, %v821_v10, 0 }
 0x24d   : > { %v583_v54 = vpop.xlane.xlu2 %582 }
 0x24e   : > { %v591_v56 = vsub.f32 %v558_v20, %v583_v54 }
 0x250   : > { %v606_v58 = vmul.f32 1.442695, %v591_v56 }
 0x252   : > { %2378 = vpow2.f32 %v606_v58  ;;  %789 = vrot.lane.b32.xlu2 %v2295_v52, %s2581_s15  ;;  %627 = vadd.xlane.f32.xlu1 %v626_v59 }
 0x253   : > { %2380 = vpow2.f32 %v602_v63 }
 0x254   : > { %2382 = vpow2.f32 %v594_v5 }
 0x258   : > { %v2786_v31 = vpop.eup %2378 }
 0x259   : > { %v629_v61 = vsel %vm559_vm3, %v2786_v31, 0.0  ;;  %v2381_v1 = vpop.eup %2380 }
 0x25a   : > { %711 = vrot.lane.b32.xlu2 %v2702_v34, %s2579_s9  ;;  %630 = vadd.xlane.f32.xlu1 %v629_v61  ;;  %v623_v2 = vsel %vm559_vm3, %v2381_v1, 0.0  ;;  %v2797_v6 = vpop.eup %2382  ;;  %v2799_v34 = vld [vmem:[#allocation2 + $0x18] sm:$0xff] }
 0x25b   : > { %v611_v7 = vsel %vm559_vm3, %v2797_v6, 0.0 }
 0x26e   : > { %624 = vadd.xlane.f32.xlu0 %v623_v2 }
 0x273   : > { %818 = vrot.lane.b32.xlu1 %v2761_v21, %s2581_s15 }
 0x27b   : > { %1017 = vrot.lane.b32.xlu1 %v2295_v52, %s2582_s16 }
 0x282   : > { %878 = vrot.lane.b32.xlu0 %v2799_v34, %s2580_s14 }
 0x283   : > { %612 = vadd.xlane.f32.xlu2 %v611_v7 }
 0x29b   : > { %849 = vrot.lane.b32.xlu2 %v2805_v8, %s2580_s14  ;;  %s2589_s14 = smov 16  }
 0x2a3   : > { %847 = vrot.lane.b32.xlu2 %v2805_v8, %s2581_s15  ;;  %v616_v12 = vpop.xlane.xlu0 %615 }
 0x2a4   : > { %2384 = vrcp.f32 %v616_v12 }
 0x2a5   : > { %v610_v0 = vpop.xlane.xlu2 %609 }
 0x2aa   : > { %v2385_v22 = vpop.eup %2384 }
 0x2ab   : > { %876 = vrot.lane.b32.xlu2 %v2799_v34, %s2581_s15  ;;  %v642_v24 = vmul.f32 %v2385_v22, %v2766_v30  ;;  %s2590_s15 = smov 8  }
 0x2ad   : > { %v792_v11 = vpop.permute.xlu2 %791  ;;  %v650_v26 = vpack.c.bf16 %v642_v24, %v642_v24 }
 0x2ae   : > { %v797_v17 = vsel %vm441_vm2, %v792_v11, 0 }
 0x2af   : > { %v683_v29 = vunpack.c.l.b16 %v650_v26 }
 0x2b5   : > { %v622_v13 = vpop.xlane.xlu1 %621  ;;  %v790_v15 = vpop.permute.xlu2 %789 }
 0x2b6   : > { %v687_v16 = vpop.permute.xlu0 %686 }
 0x2b7   : > { %699 = vmatpush.bf16.msra.mxu3 %v687_v16 }
 0x2bb   : > { %806 = vmatpush.bf16.xpose.msrb.mxu3 %v797_v17 }
 0x2bd   : > { %v619_v18 = vpop.xlane.xlu1 %618  ;;  %v712_v20 = vpop.permute.xlu2 %711 }
 0x2be   : > { %2386 = vrcp.f32 %v619_v18  ;;  %724 = vmatpush.bf16.msrb.mxu1 %v712_v20 }
 0x2bf   : > { %2388 = vrcp.f32 %v622_v13 }
 0x2c2   : > { %835 = vmatpush.bf16.xpose.msra.mxu1 %v826_v23 }
 0x2c4   : > { %v2387_v25 = vpop.eup %2386 }
 0x2c5   : > { %v643_v27 = vmul.f32 %v2387_v25, %v2375_v51  ;;  %v628_v36 = vpop.xlane.xlu1 %627  ;;  %v2389_v39 = vpop.eup %2388 }
 0x2c6   : > { %v644_v40 = vmul.f32 %v2389_v39, %v2774_v43 }
 0x2c7   : > { %v651_v28 = vpack.c.bf16 %v643_v27, %v643_v27 }
 0x2c8   : > { %v652_v42 = vpack.c.bf16 %v644_v40, %v644_v40 }
 0x2c9   : > { %v684_v32 = vunpack.c.l.b16 %v651_v28 }
 0x2ca   : > { %v708_v47 = vunpack.c.l.b16 %v652_v42 }
 0x2cb   : > { %v685_v35 = vpack.c.b16 %v684_v32, %v683_v29 }
 0x2cd   : > { %2174 = vmatmul.msk.bf16.vlgmr.msra.gmra.mxu3 %vm559_vm3, %v685_v35  ;;  %v631_v37 = vpop.xlane.xlu1 %630 }
 0x2dd   : > { %2183 = vmatmul.msk.bf16.vlgmr.msrb.gmra.mxu3 %vm441_vm2, %v790_v15 }
 0x2e1   : > { %v625_v38 = vpop.xlane.xlu0 %624 }
 0x2e2   : > { %2390 = vrcp.f32 %v625_v38 }
 0x2e3   : > { %2392 = vrcp.f32 %v610_v0 }
 0x2e5   : > { %v819_v30 = vpop.permute.xlu1 %818 }
 0x2e8   : > { %v2391_v41 = vpop.eup %2390 }
 0x2e9   : > { %v645_v44 = vmul.f32 %v2391_v41, %v2381_v1  ;;  %v2393_v56 = vpop.eup %2392 }
 0x2ea   : > { %v640_v43 = vmul.f32 %v2393_v56, %v2770_v33 }
 0x2eb   : > { %v653_v45 = vpack.c.bf16 %v645_v44, %v645_v44 }
 0x2ec   : > { %v648_v59 = vpack.c.bf16 %v640_v43, %v640_v43 }
 0x2ed   : > { %v709_v48 = vunpack.c.l.b16 %v653_v45  ;;  %v1018_v50 = vpop.permute.xlu1 %1017 }
 0x2ee   : > { %1030 = vmatpush.bf16.msrb.mxu0 %v1018_v50  ;;  %v658_v1 = vunpack.c.l.b16 %v648_v59 }
 0x2ef   : > { %v710_v51 = vpack.c.b16 %v709_v48, %v708_v47 }
 0x2f1   : > { %2175 = vmatmul.msk.bf16.vlgmr.msrb.gmra.mxu1 %vm559_vm3, %v710_v51 }
 0x2f4   : > { %v879_v52 = vpop.permute.xlu0 %878 }
 0x2f5   : > { %v884_v53 = vsel %vm441_vm2, %v879_v52, 0 }
 0x2f6   : > { %v613_v54 = vpop.xlane.xlu2 %612  ;;  %893 = vmatpush.bf16.xpose.msra.mxu3 %v884_v53 }
 0x2f7   : > { %2394 = vrcp.f32 %v613_v54 }
 0x2f8   : > { %2396 = vrcp.f32 %v631_v37  ;;  %v2178_v37 = vld [vmem:[%s3289_s1 + $0x18] sm:$0xff] }
 0x2f9   : > { %2398 = vrcp.f32 %v628_v36 }
 0x2fd   : > { %v2395_v58 = vpop.eup %2394 }
 0x2fe   : > { %v641_v61 = vmul.f32 %v2395_v58, %v2797_v6  ;;  %v850_v62 = vpop.permute.xlu2 %849  ;;  %v2397_v5 = vpop.eup %2396 }
 0x2ff   : > { %v855_v7 = vsel %vm441_vm2, %v850_v62, 0  ;;  %v2399_v33 = vpop.eup %2398  ;;  %v647_v10 = vmul.f32 %v2397_v5, %v2786_v31 }
 0x300   : > { %v649_v63 = vpack.c.bf16 %v641_v61, %v641_v61  ;;  %v646_v6 = vmul.f32 %v2399_v33, %v2782_v55  ;;  %v2177_v55 = vld [vmem:[%s3289_s1 + $0x10] sm:$0xff] }
 0x301   : > { %2188 = vmatmul.msk.bf16.vlgmr.msra.gmra.mxu1 %vm441_vm2, %v819_v30  ;;  %v655_v11 = vpack.c.bf16 %v647_v10, %v647_v10 }
 0x302   : > { %v659_v2 = vunpack.c.l.b16 %v649_v63  ;;  %v654_v12 = vpack.c.bf16 %v646_v6, %v646_v6  ;;  %v2871_v6 = vld [vmem:[#allocation2] sm:$0xff] }
 0x303   : > { %v734_v15 = vunpack.c.l.b16 %v655_v11 }
 0x304   : > { %v660_v3 = vpack.c.b16 %v659_v2, %v658_v1  ;;  %v733_v16 = vunpack.c.l.b16 %v654_v12 }
 0x306   : > { %2173 = vmatmul.msk.bf16.vlgmr.msra.gmra.mxu2 %vm559_vm3, %v660_v3  ;;  %v848_v0 = vpop.permute.xlu2 %847  ;;  %v735_v17 = vpack.c.b16 %v734_v15, %v733_v16 }
 0x307   : > { %864 = vmatpush.bf16.xpose.msra.mxu2 %v855_v7 }
 0x30e   : > { %v877_v13 = vpop.permute.xlu2 %876 }
 0x30f   : > { %2198 = vmatmul.msk.bf16.vlgmr.msra.gmra.mxu3 %vm441_vm2, %v877_v13 }
 0x316   : > { %2176 = vmatmul.msk.bf16.vlgmr.msrb.gmra.mxu2 %vm559_vm3, %v735_v17 }
 0x326   : > { %2193 = vmatmul.msk.bf16.vlgmr.msra.gmra.mxu2 %vm441_vm2, %v848_v0 }
 0x350   : > { %v701_v18 = vpop.f32.mrf.mxu3 }
 0x351   : > { %v758_v20 = vpack.c.bf16 %v701_v18, %v701_v18 }
 0x353   : > { %767 = vst.msk [vmem:[#allocation3 + $0x8] sm:$0xf] %vm764_vm4, %v758_v20  ;;  %v2887_v20 = vld [vmem:[#allocation2 + $0x10] sm:$0xff] }
 0x358   : > { %v703_v31 = vpop.f32.mrf.mxu3 }
 0x359   : > { %v759_v22 = vpack.c.bf16 %v703_v31, %v703_v31 }
 0x35b   : > { %768 = vst.msk [vmem:[#allocation3 + $0xc] sm:$0xf] %vm764_vm4, %v759_v22 }
 0x360   : > { %v808_v23 = vpop.f32.mrf.mxu3 }
 0x361   : > { %v809_v24 = vadd.f32 %v2177_v55, %v808_v23 }
 0x363   : > { %v2835_v25 = vadd.f32 %v809_v24, %v2721_v49 }
 0x365   : > { %v916_v26 = vsel %vm559_vm3, %v2835_v25, -inf }
 0x366   : > { %917 = vmax.xlane.f32.xlu1 %v916_v26 }
 0x368   : > { %v810_v38 = vpop.f32.mrf.mxu3 }
 0x369   : > { %v811_v40 = vadd.f32 %v2178_v37, %v810_v38 }
 0x36b   : > { %v2850_v44 = vadd.f32 %v811_v40, %v2732_v60 }
 0x36d   : > { %v919_v51 = vsel %vm559_vm3, %v2850_v44, -inf }
 0x36e   : > { %v726_v27 = vpop.f32.mrf.mxu1 }
 0x36f   : > { %v760_v28 = vpack.c.bf16 %v726_v27, %v726_v27 }
 0x371   : > { %769 = vst.msk [vmem:[#allocation3 + $0x10] sm:$0xf] %vm764_vm4, %v760_v28 }
 0x376   : > { %v728_v29 = vpop.f32.mrf.mxu1 }
 0x377   : > { %v761_v32 = vpack.c.bf16 %v728_v29, %v728_v29 }
 0x379   : > { %770 = vst.msk [vmem:[#allocation3 + $0x14] sm:$0xf] %vm764_vm4, %v761_v32 }
 0x37e   : > { %v837_v35 = vpop.f32.mrf.mxu1 }
 0x37f   : > { %v838_v36 = vadd.f32 %v2177_v55, %v837_v35 }
 0x381   : > { %v2845_v39 = vadd.f32 %v838_v36, %v2719_v46 }
 0x383   : > { %v922_v30 = vsel %vm559_vm3, %v2845_v39, -inf }
 0x384   : > { %923 = vmax.xlane.f32.xlu2 %v922_v30 }
 0x386   : > { %v839_v41 = vpop.f32.mrf.mxu1 }
 0x387   : > { %v840_v42 = vadd.f32 %v2178_v37, %v839_v41 }
 0x389   : > { %v676_v45 = vpop.f32.mrf.mxu2  ;;  %v2853_v47 = vadd.f32 %v840_v42, %v2730_v57 }
 0x38a   : > { %v756_v48 = vpack.c.bf16 %v676_v45, %v676_v45 }
 0x38b   : > { %v925_v50 = vsel %vm559_vm3, %v2853_v47, -inf }
 0x38c   : > { %765 = vst.msk [vmem:[#allocation3] sm:$0xf] %vm764_vm4, %v756_v48  ;;  %926 = vmax.xlane.f32.xlu1 %v925_v50  ;;  %920 = vmax.xlane.f32.xlu2 %v919_v51 }
 0x391   : > { %v678_v52 = vpop.f32.mrf.mxu2 }
 0x392   : > { %v757_v53 = vpack.c.bf16 %v678_v52, %v678_v52  ;;  %v895_v59 = vpop.f32.mrf.mxu3 }
 0x393   : > { %v896_v11 = vadd.f32 %v2177_v55, %v895_v59 }
 0x394   : > { %766 = vst.msk [vmem:[#allocation3 + $0x4] sm:$0xf] %vm764_vm4, %v757_v53 }
 0x395   : > { %v2876_v12 = vadd.f32 %v896_v11, %v2745_v9 }
 0x397   : > { %v934_v13 = vsel %vm559_vm3, %v2876_v12, -inf }
 0x399   : > { %v751_v54 = vpop.f32.mrf.mxu2 }
 0x39a   : > { %v762_v56 = vpack.c.bf16 %v751_v54, %v751_v54  ;;  %v897_v5 = vpop.f32.mrf.mxu3 }
 0x39b   : > { %v898_v0 = vadd.f32 %v2178_v37, %v897_v5 }
 0x39c   : > { %771 = vst.msk [vmem:[#allocation3 + $0x18] sm:$0xf] %vm764_vm4, %v762_v56 }
 0x39d   : > { %v915_v10 = vadd.f32 %v898_v0, %v2758_v19 }
 0x3a1   : > { %v753_v43 = vpop.f32.mrf.mxu2 }
 0x3a2   : > { %v763_v58 = vpack.c.bf16 %v753_v43, %v753_v43 }
 0x3a4   : > { %772 = vst.msk [vmem:[#allocation3 + $0x1c] sm:$0xf] %vm764_vm4, %v763_v58  ;;  %1067 = vrot.lane.b32.xlu2 %v2805_v8, %s2582_s16  ;;  %v937_v8 = vsel %vm559_vm3, %v915_v10, -inf }
 0x3a9   : > { %v866_v61 = vpop.f32.mrf.mxu2 }
 0x3aa   : > { %v867_v62 = vadd.f32 %v2177_v55, %v866_v61 }
 0x3ac   : > { %v912_v63 = vadd.f32 %v867_v62, %v2741_v4 }
 0x3ae   : > { %v928_v1 = vsel %vm559_vm3, %v912_v63, -inf }
 0x3af   : > { %929 = vmax.xlane.f32.xlu0 %v928_v1 }
 0x3b1   : > { %v868_v2 = vpop.f32.mrf.mxu2 }
 0x3b2   : > { %v869_v3 = vadd.f32 %v2178_v37, %v868_v2 }
 0x3b4   : > { %v913_v7 = vadd.f32 %v869_v3, %v2749_v14 }
 0x3b6   : > { %v931_v33 = vsel %vm559_vm3, %v913_v7, -inf }
 0x3b7   : > { %932 = vmax.xlane.f32.xlu1 %v931_v33  ;;  %v2937_v33 = vld [vmem:[#allocation2 + $0x18] sm:$0xff] }
 0x3bf   : > { %938 = vmax.xlane.f32.xlu1 %v937_v8 }
 0x3c3   : > { %1179 = vrot.lane.b32.xlu0 %v2871_v6, %s2583_s22 }
 0x3cd   : > { %935 = vmax.xlane.f32.xlu2 %v934_v13 }
 0x3d8   : > { %1042 = vrot.lane.b32.xlu1 %v2761_v21, %s2582_s16  ;;  %v2893_v21 = vld [vmem:[#allocation2 + $0x8] sm:$0xff] }
 0x3d9   : > { %v918_v15 = vpop.xlane.xlu1 %917 }
 0x3da   : > { %v940_v16 = vsub.f32 %v2835_v25, %v918_v15 }
 0x3dc   : > { %v948_v17 = vmul.f32 1.442695, %v940_v16 }
 0x3de   : > { %2400 = vpow2.f32 %v948_v17 }
 0x3e4   : > { %v2885_v18 = vpop.eup %2400 }
 0x3e5   : > { %1177 = vrot.lane.b32.xlu2 %v2871_v6, %s2584_s23  ;;  %v964_v31 = vsel %vm559_vm3, %v2885_v18, 0.0 }
 0x3ed   : > { %965 = vadd.xlane.f32.xlu0 %v964_v31  ;;  %1237 = vrot.lane.b32.xlu2 %v2887_v20, %s2583_s22 }
 0x3f5   : > { %1208 = vrot.lane.b32.xlu2 %v2893_v21, %s2583_s22 }
 0x3f7   : > { %v924_v22 = vpop.xlane.xlu2 %923 }
 0x3f8   : > { %v942_v55 = vsub.f32 %v2845_v39, %v924_v22 }
 0x3fa   : > { %v952_v23 = vmul.f32 1.442695, %v942_v55 }
 0x3fc   : > { %2402 = vpow2.f32 %v952_v23 }
 0x3fd   : > { %1092 = vrot.lane.b32.xlu2 %v2799_v34, %s2582_s16  ;;  %s2591_s16 = smov 24  }
 0x3ff   : > { %v921_v24 = vpop.xlane.xlu2 %920  ;;  %v927_v32 = vpop.xlane.xlu1 %926 }
 0x400   : > { %v941_v28 = vsub.f32 %v2850_v44, %v921_v24  ;;  %v943_v35 = vsub.f32 %v2853_v47, %v927_v32 }
 0x402   : > { %v2900_v25 = vpop.eup %2402  ;;  %v950_v29 = vmul.f32 1.442695, %v941_v28  ;;  %v954_v36 = vmul.f32 1.442695, %v943_v35 }
 0x403   : > { %v970_v26 = vsel %vm559_vm3, %v2900_v25, 0.0 }
 0x404   : > { %971 = vadd.xlane.f32.xlu0 %v970_v26  ;;  %2404 = vpow2.f32 %v950_v29 }
 0x405   : > { %2406 = vpow2.f32 %v954_v36 }
 0x407   : > { %v1068_v27 = vpop.permute.xlu2 %1067 }
 0x408   : > { %1080 = vmatpush.bf16.msrb.mxu2 %v1068_v27 }
 0x40a   : > { %v2906_v37 = vpop.eup %2404 }
 0x40b   : > { %v967_v40 = vsel %vm559_vm3, %v2906_v37, 0.0  ;;  %v2910_v30 = vpop.eup %2406 }
 0x40c   : > { %v973_v47 = vsel %vm559_vm3, %v2910_v30, 0.0 }
 0x422   : > { %v930_v34 = vpop.xlane.xlu0 %929 }
 0x423   : > { %v944_v38 = vsub.f32 %v912_v63, %v930_v34 }
 0x425   : > { %v956_v39 = vmul.f32 1.442695, %v944_v38 }
 0x426   : > { %968 = vadd.xlane.f32.xlu2 %v967_v40 }
 0x427   : > { %2408 = vpow2.f32 %v956_v39 }
 0x42a   : > { %v933_v41 = vpop.xlane.xlu1 %932 }
 0x42b   : > { %v945_v42 = vsub.f32 %v913_v7, %v933_v41 }
 0x42d   : > { %v2912_v44 = vpop.eup %2408  ;;  %v958_v45 = vmul.f32 1.442695, %v945_v42 }
 0x42e   : > { %974 = vadd.xlane.f32.xlu2 %v973_v47  ;;  %v976_v48 = vsel %vm559_vm3, %v2912_v44, 0.0 }
 0x42f   : > { %2410 = vpow2.f32 %v958_v45  ;;  %977 = vadd.xlane.f32.xlu0 %v976_v48 }
 0x432   : > { %v939_v50 = vpop.xlane.xlu1 %938 }
 0x433   : > { %v947_v51 = vsub.f32 %v915_v10, %v939_v50 }
 0x435   : > { %v2918_v52 = vpop.eup %2410  ;;  %v962_v53 = vmul.f32 1.442695, %v947_v51  ;;  %v1180_v54 = vpop.permute.xlu0 %1179 }
 0x436   : > { %v1185_v56 = vsel %vm441_vm2, %v1180_v54, 0  ;;  %v979_v43 = vsel %vm559_vm3, %v2918_v52, 0.0 }
 0x437   : > { %2412 = vpow2.f32 %v962_v53  ;;  %980 = vadd.xlane.f32.xlu2 %v979_v43  ;;  %1194 = vmatpush.bf16.xpose.msra.mxu0 %v1185_v56 }
 0x43d   : > { %v2923_v58 = vpop.eup %2412 }
 0x43e   : > { %v985_v59 = vsel %vm559_vm3, %v2923_v58, 0.0 }
 0x43f   : > { %986 = vadd.xlane.f32.xlu0 %v985_v59 }
 0x440   : > { %v936_v61 = vpop.xlane.xlu2 %935 }
 0x441   : > { %v946_v62 = vsub.f32 %v2876_v12, %v936_v61 }
 0x443   : > { %v960_v63 = vmul.f32 1.442695, %v946_v62 }
 0x445   : > { %2414 = vpow2.f32 %v960_v63 }
 0x448   : > { %v2928_v1 = vpop.permute.xlu2 %1177 }
 0x44a   : > { %v1043_v2 = vpop.permute.xlu1 %1042 }
 0x44b   : > { %v2930_v3 = vpop.eup %2414  ;;  %1055 = vmatpush.bf16.msrb.mxu1 %v1043_v2 }
 0x44c   : > { %v982_v5 = vsel %vm559_vm3, %v2930_v3, 0.0 }
 0x44d   : > { %983 = vadd.xlane.f32.xlu1 %v982_v5 }
 0x44f   : > { %1206 = vrot.lane.b32.xlu2 %v2893_v21, %s2584_s23 }
 0x450   : > { %v1238_v7 = vpop.permute.xlu2 %1237 }
 0x451   : > { %v1243_v0 = vsel %vm441_vm2, %v1238_v7, 0 }
 0x452   : > { %1252 = vmatpush.bf16.xpose.msra.mxu2 %v1243_v0 }
 0x453   : > { %1266 = vrot.lane.b32.xlu0 %v2937_v33, %s2583_s22 }
 0x457   : > { %1264 = vrot.lane.b32.xlu2 %v2937_v33, %s2584_s23 }
 0x458   : > { %v1209_v10 = vpop.permute.xlu2 %1208 }
 0x459   : > { %v1214_v8 = vsel %vm441_vm2, %v1209_v10, 0 }
 0x45a   : > { %1223 = vmatpush.bf16.xpose.msra.mxu1 %v1214_v8 }
 0x45b   : > { %1405 = vrot.lane.b32.xlu0 %v2871_v6, %s2585_s25 }
 0x460   : > { %v1093_v11 = vpop.permute.xlu2 %1092  ;;  %v966_v12 = vpop.xlane.xlu0 %965 }
 0x461   : > { %1105 = vmatpush.bf16.msrb.mxu3 %v1093_v11  ;;  %2416 = vrcp.f32 %v966_v12 }
 0x466   : > { %1235 = vrot.lane.b32.xlu1 %v2887_v20, %s2584_s23  ;;  %s314_s23 = scalar_lea.vmem %s3295_s7, %s2124_s17 }
 0x467   : > { %v2417_v16 = vpop.eup %2416 }
 0x468   : > { %v996_v17 = vmul.f32 %v2417_v16, %v2885_v18 }
 0x46a   : > { %v1004_v22 = vpack.c.bf16 %v996_v17, %v996_v17 }
 0x46c   : > { %v1014_v27 = vunpack.c.l.b16 %v1004_v22  ;;  %v2204_v22 = vld [vmem:[%s3289_s1 + $0x28] sm:$0xff] }
 0x477   : > { %v972_v13 = vpop.xlane.xlu0 %971 }
 0x499   : > { %v969_v15 = vpop.xlane.xlu2 %968 }
 0x49a   : > { %2418 = vrcp.f32 %v969_v15 }
 0x49b   : > { %2420 = vrcp.f32 %v972_v13 }
 0x4a0   : > { %v2419_v31 = vpop.eup %2418 }
 0x4a1   : > { %v997_v55 = vmul.f32 %v2419_v31, %v2906_v37  ;;  %v975_v23 = vpop.xlane.xlu2 %974  ;;  %v2421_v6 = vpop.eup %2420 }
 0x4a2   : > { %2422 = vrcp.f32 %v975_v23  ;;  %v978_v24 = vpop.xlane.xlu0 %977  ;;  %v998_v28 = vmul.f32 %v2421_v6, %v2900_v25 }
 0x4a3   : > { %v1005_v26 = vpack.c.bf16 %v997_v55, %v997_v55  ;;  %2424 = vrcp.f32 %v978_v24 }
 0x4a4   : > { %v1006_v36 = vpack.c.bf16 %v998_v28, %v998_v28 }
 0x4a5   : > { %v1015_v29 = vunpack.c.l.b16 %v1005_v26 }
 0x4a6   : > { %v1039_v39 = vunpack.c.l.b16 %v1006_v36 }
 0x4a7   : > { %v1016_v32 = vpack.c.b16 %v1015_v29, %v1014_v27 }
 0x4a8   : > { %v2423_v35 = vpop.eup %2422 }
 0x4a9   : > { %v999_v34 = vmul.f32 %v2423_v35, %v2910_v30  ;;  %2199 = vmatmul.msk.bf16.vlgmr.msrb.gmra.mxu0 %vm559_vm3, %v1016_v32  ;;  %v2425_v38 = vpop.eup %2424 }
 0x4aa   : > { %v981_v18 = vpop.xlane.xlu2 %980  ;;  %v1000_v41 = vmul.f32 %v2425_v38, %v2912_v44 }
 0x4ab   : > { %v1007_v37 = vpack.c.bf16 %v999_v34, %v999_v34  ;;  %2426 = vrcp.f32 %v981_v18 }
 0x4ac   : > { %v1008_v25 = vpack.c.bf16 %v1000_v41, %v1000_v41 }
 0x4ad   : > { %v1040_v40 = vunpack.c.l.b16 %v1007_v37 }
 0x4ae   : > { %v1064_v50 = vunpack.c.l.b16 %v1008_v25 }
 0x4af   : > { %v1041_v42 = vpack.c.b16 %v1040_v40, %v1039_v39 }
 0x4b1   : > { %v2427_v45 = vpop.eup %2426  ;;  %2200 = vmatmul.msk.bf16.vlgmr.msrb.gmra.mxu1 %vm559_vm3, %v1041_v42 }
 0x4b2   : > { %v1001_v47 = vmul.f32 %v2427_v45, %v2918_v52  ;;  %v987_v53 = vpop.xlane.xlu0 %986  ;;  %v1207_v54 = vpop.permute.xlu2 %1206 }
 0x4b3   : > { %2428 = vrcp.f32 %v987_v53 }
 0x4b4   : > { %v1009_v48 = vpack.c.bf16 %v1001_v47, %v1001_v47 }
 0x4b6   : > { %v1065_v30 = vunpack.c.l.b16 %v1009_v48 }
 0x4b8   : > { %v1066_v51 = vpack.c.b16 %v1065_v30, %v1064_v50 }
 0x4b9   : > { %2209 = vmatmul.msk.bf16.vlgmr.msra.gmra.mxu0 %vm441_vm2, %v2928_v1  ;;  %v2429_v56 = vpop.eup %2428 }
 0x4ba   : > { %2201 = vmatmul.msk.bf16.vlgmr.msrb.gmra.mxu2 %vm559_vm3, %v1066_v51  ;;  %v1003_v43 = vmul.f32 %v2429_v56, %v2923_v58  ;;  %v1265_v58 = vpop.permute.xlu2 %1264 }
 0x4bc   : > { %v1011_v62 = vpack.c.bf16 %v1003_v43, %v1003_v43 }
 0x4be   : > { %v1090_v2 = vunpack.c.l.b16 %v1011_v62 }
 0x4c0   : > { %v984_v44 = vpop.xlane.xlu1 %983 }
 0x4c1   : > { %2430 = vrcp.f32 %v984_v44  ;;  %2214 = vmatmul.msk.bf16.vlgmr.msra.gmra.mxu1 %vm441_vm2, %v1207_v54 }
 0x4c5   : > { %v1267_v52 = vpop.permute.xlu0 %1266 }
 0x4c6   : > { %v1272_v59 = vsel %vm441_vm2, %v1267_v52, 0 }
 0x4c7   : > { %v2431_v61 = vpop.eup %2430  ;;  %1281 = vmatpush.bf16.xpose.msra.mxu3 %v1272_v59 }
 0x4c8   : > { %v1002_v63 = vmul.f32 %v2431_v61, %v2930_v3  ;;  %v2203_v3 = vld [vmem:[%s3289_s1 + $0x20] sm:$0xff] }
 0x4ca   : > { %v1010_v1 = vpack.c.bf16 %v1002_v63, %v1002_v63 }
 0x4cc   : > { %v1089_v5 = vunpack.c.l.b16 %v1010_v1 }
 0x4cd   : > { %v1406_v7 = vpop.permute.xlu0 %1405 }
 0x4ce   : > { %v1091_v0 = vpack.c.b16 %v1090_v2, %v1089_v5  ;;  %1418 = vmatpush.bf16.msrb.mxu0 %v1406_v7 }
 0x4d0   : > { %2202 = vmatmul.msk.bf16.vlgmr.msrb.gmra.mxu3 %vm559_vm3, %v1091_v0 }
 0x4d8   : > { %v1236_v10 = vpop.permute.xlu1 %1235 }
 0x4d9   : > { %2219 = vmatmul.msk.bf16.vlgmr.msra.gmra.mxu2 %vm441_vm2, %v1236_v10 }
 0x4e0   : > { %2224 = vmatmul.msk.bf16.vlgmr.msra.gmra.mxu3 %vm441_vm2, %v1265_v58 }
 0x526   : > { %v2966_v8 = vpop.f32.mrf.mxu0 }
 0x52e   : > { %v2968_v11 = vpop.f32.mrf.mxu0  ;;  %v2970_v12 = vpop.f32.mrf.mxu1 }
 0x536   : > { %v2975_v13 = vpop.f32.mrf.mxu1  ;;  %v1196_v15 = vpop.f32.mrf.mxu0 }
 0x537   : > { %v1197_v16 = vadd.f32 %v2203_v3, %v1196_v15 }
 0x539   : > { %v1296_v17 = vadd.f32 %v1197_v16, %v2721_v49 }
 0x53b   : > { %v1304_v31 = vsel %vm559_vm3, %v1296_v17, -inf }
 0x53c   : > { %1305 = vmax.xlane.f32.xlu2 %v1304_v31 }
 0x53d   : > { %v2990_v36 = vpop.f32.mrf.mxu2 }
 0x53e   : > { %v1198_v55 = vpop.f32.mrf.mxu0  ;;  %v1225_v23 = vpop.f32.mrf.mxu1 }
 0x53f   : > { %v1199_v6 = vadd.f32 %v2204_v22, %v1198_v55  ;;  %v1226_v24 = vadd.f32 %v2203_v3, %v1225_v23 }
 0x541   : > { %v1297_v26 = vadd.f32 %v1199_v6, %v2732_v60  ;;  %v2984_v27 = vadd.f32 %v1226_v24, %v2719_v46 }
 0x543   : > { %v1307_v28 = vsel %vm559_vm3, %v1297_v26, -inf  ;;  %v1310_v49 = vsel %vm559_vm3, %v2984_v27, -inf }
 0x544   : > { %1308 = vmax.xlane.f32.xlu0 %v1307_v28  ;;  %1311 = vmax.xlane.f32.xlu1 %v1310_v49 }
 0x545   : > { %v2995_v46 = vpop.f32.mrf.mxu2 }
 0x546   : > { %v1227_v29 = vpop.f32.mrf.mxu1 }
 0x547   : > { %v1228_v32 = vadd.f32 %v2204_v22, %v1227_v29 }
 0x549   : > { %v1299_v35 = vadd.f32 %v1228_v32, %v2730_v57 }
 0x54b   : > { %v1313_v34 = vsel %vm559_vm3, %v1299_v35, -inf }
 0x54c   : > { %1314 = vmax.xlane.f32.xlu2 %v1313_v34 }
 0x553   : > { %v2993_v60 = vpop.f32.mrf.mxu3 }
 0x55b   : > { %v2997_v18 = vpop.f32.mrf.mxu3 }
 0x55c   : > { %v1254_v38 = vpop.f32.mrf.mxu2 }
 0x55d   : > { %v1255_v37 = vadd.f32 %v2203_v3, %v1254_v38  ;;  %v3058_v38 = vld [vmem:[#allocation2 + $0x18] sm:$0xff] }
 0x55f   : > { %v3000_v39 = vadd.f32 %v1255_v37, %v2741_v4 }
 0x561   : > { %v1316_v40 = vsel %vm559_vm3, %v3000_v39, -inf }
 0x562   : > { %1317 = vmax.xlane.f32.xlu0 %v1316_v40 }
 0x563   : > { %v1283_v57 = vpop.f32.mrf.mxu3 }
 0x564   : > { %v1284_v41 = vadd.f32 %v2203_v3, %v1283_v57  ;;  %v1256_v42 = vpop.f32.mrf.mxu2 }
 0x565   : > { %v1257_v45 = vadd.f32 %v2204_v22, %v1256_v42 }
 0x566   : > { %v1302_v25 = vadd.f32 %v1284_v41, %v2745_v9  ;;  %v3015_v9 = vld [vmem:[#allocation2] sm:$0xff] }
 0x567   : > { %v1301_v47 = vadd.f32 %v1257_v45, %v2749_v14  ;;  %v3019_v14 = vld [vmem:[#allocation2 + $0x8] sm:$0xff] }
 0x568   : > { %v1322_v48 = vsel %vm559_vm3, %v1302_v25, -inf }
 0x569   : > { %1323 = vmax.xlane.f32.xlu1 %v1322_v48  ;;  %v1319_v50 = vsel %vm559_vm3, %v1301_v47, -inf }
 0x56a   : > { %1320 = vmax.xlane.f32.xlu2 %v1319_v50 }
 0x56b   : > { %v1285_v4 = vpop.f32.mrf.mxu3 }
 0x56c   : > { %v1286_v30 = vadd.f32 %v2204_v22, %v1285_v4 }
 0x56e   : > { %v3009_v51 = vadd.f32 %v1286_v30, %v2758_v19  ;;  %v3025_v19 = vld [vmem:[#allocation2 + $0x10] sm:$0xff] }
 0x570   : > { %v1325_v53 = vsel %vm559_vm3, %v3009_v51, -inf }
 0x571   : > { %1326 = vmax.xlane.f32.xlu0 %v1325_v53 }
 0x582   : > { %1430 = vrot.lane.b32.xlu1 %v2893_v21, %s2585_s25 }
 0x585   : > { %1565 = vrot.lane.b32.xlu0 %v3015_v9, %s2586_s30 }
 0x58a   : > { %1596 = vrot.lane.b32.xlu1 %v3019_v14, %s2587_s8 }
 0x58d   : > { %1455 = vrot.lane.b32.xlu0 %v2887_v20, %s2585_s25 }
 0x592   : > { %1625 = vrot.lane.b32.xlu1 %v3025_v19, %s2587_s8 }
 0x59a   : > { %1594 = vrot.lane.b32.xlu1 %v3019_v14, %s2586_s30 }
 0x5a2   : > { %1480 = vrot.lane.b32.xlu1 %v2937_v33, %s2585_s25 }
 0x5af   : > { %v1306_v21 = vpop.xlane.xlu2 %1305 }
 0x5b0   : > { %v1328_v54 = vsub.f32 %v1296_v17, %v1306_v21 }
 0x5b2   : > { %v1336_v44 = vmul.f32 1.442695, %v1328_v54 }
 0x5b4   : > { %2432 = vpow2.f32 %v1336_v44 }
 0x5b7   : > { %v1309_v56 = vpop.xlane.xlu0 %1308  ;;  %v1312_v7 = vpop.xlane.xlu1 %1311 }
 0x5b8   : > { %v1329_v52 = vsub.f32 %v1297_v26, %v1309_v56  ;;  %v1330_v6 = vsub.f32 %v2984_v27, %v1312_v7 }
 0x5ba   : > { %v3033_v43 = vpop.eup %2432  ;;  %v1338_v59 = vmul.f32 1.442695, %v1329_v52  ;;  %v1340_v24 = vmul.f32 1.442695, %v1330_v6 }
 0x5bb   : > { %v1352_v20 = vsel %vm559_vm3, %v3033_v43, 0.0 }
 0x5bc   : > { %1353 = vadd.xlane.f32.xlu2 %v1352_v20  ;;  %2434 = vpow2.f32 %v1338_v59 }
 0x5bf   : > { %v1315_v61 = vpop.xlane.xlu2 %1314 }
 0x5c0   : > { %v1331_v62 = vsub.f32 %v1299_v35, %v1315_v61 }
 0x5c2   : > { %v1342_v63 = vmul.f32 1.442695, %v1331_v62  ;;  %v3037_v1 = vpop.eup %2434 }
 0x5c3   : > { %v1355_v33 = vsel %vm559_vm3, %v3037_v1, 0.0 }
 0x5c4   : > { %2436 = vpow2.f32 %v1342_v63 }
 0x5ca   : > { %v3041_v2 = vpop.eup %2436 }
 0x5cb   : > { %v1361_v5 = vsel %vm559_vm3, %v3041_v2, 0.0 }
 0x5cc   : > { %1356 = vadd.xlane.f32.xlu1 %v1355_v33 }
 0x5d4   : > { %1567 = vrot.lane.b32.xlu2 %v3015_v9, %s2587_s8  ;;  %1362 = vadd.xlane.f32.xlu1 %v1361_v5 }
 0x5d5   : > { %v1318_v31 = vpop.xlane.xlu0 %1317 }
 0x5d6   : > { %v1332_v28 = vsub.f32 %v3000_v39, %v1318_v31 }
 0x5d8   : > { %v1344_v29 = vmul.f32 1.442695, %v1332_v28 }
 0x5dc   : > { %v1324_v0 = vpop.xlane.xlu1 %1323 }
 0x5dd   : > { %v1334_v10 = vsub.f32 %v1302_v25, %v1324_v0  ;;  %v1321_v58 = vpop.xlane.xlu2 %1320 }
 0x5de   : > { %v1333_v3 = vsub.f32 %v1301_v47, %v1321_v58 }
 0x5df   : > { %v1348_v15 = vmul.f32 1.442695, %v1334_v10 }
 0x5e0   : > { %v1346_v16 = vmul.f32 1.442695, %v1333_v3 }
 0x5e1   : > { %2438 = vpow2.f32 %v1348_v15 }
 0x5e2   : > { %2440 = vpow2.f32 %v1346_v16 }
 0x5e3   : > { %2442 = vpow2.f32 %v1340_v24 }
 0x5e4   : > { %v1327_v26 = vpop.xlane.xlu0 %1326  ;;  %2444 = vpow2.f32 %v1344_v29 }
 0x5e5   : > { %v1335_v34 = vsub.f32 %v3009_v51, %v1327_v26 }
 0x5e7   : > { %v3047_v17 = vpop.eup %2438  ;;  %v1350_v39 = vmul.f32 1.442695, %v1335_v34 }
 0x5e8   : > { %v3049_v22 = vpop.eup %2440  ;;  %v1370_v55 = vsel %vm559_vm3, %v3047_v17, 0.0 }
 0x5e9   : > { %1371 = vadd.xlane.f32.xlu0 %v1370_v55  ;;  %v1367_v23 = vsel %vm559_vm3, %v3049_v22, 0.0  ;;  %v2443_v35 = vpop.eup %2442  ;;  %2446 = vpow2.f32 %v1350_v39 }
 0x5ea   : > { %1368 = vadd.xlane.f32.xlu1 %v1367_v23  ;;  %v1358_v40 = vsel %vm559_vm3, %v2443_v35, 0.0  ;;  %v2445_v41 = vpop.eup %2444 }
 0x5eb   : > { %v1364_v45 = vsel %vm559_vm3, %v2445_v41, 0.0 }
 0x5ef   : > { %v3068_v47 = vpop.eup %2446 }
 0x5f0   : > { %v1373_v50 = vsel %vm559_vm3, %v3068_v47, 0.0 }
 0x5f4   : > { %v1431_v49 = vpop.permute.xlu1 %1430 }
 0x5f5   : > { %1443 = vmatpush.bf16.msrb.mxu1 %v1431_v49 }
 0x5f7   : > { %v1566_v32 = vpop.permute.xlu0 %1565 }
 0x5fc   : > { %v1597_v37 = vpop.permute.xlu1 %1596 }
 0x5fd   : > { %v1602_v27 = vsel %vm441_vm2, %v1597_v37, 0  ;;  %1359 = vadd.xlane.f32.xlu2 %v1358_v40  ;;  %1654 = vrot.lane.b32.xlu0 %v3058_v38, %s2587_s8 }
 0x5fe   : > { %1611 = vmatpush.bf16.xpose.msra.mxu1 %v1602_v27 }
 0x5ff   : > { %v1456_v57 = vpop.permute.xlu0 %1455 }
 0x600   : > { %1468 = vmatpush.bf16.msrb.mxu2 %v1456_v57 }
 0x603   : > { %1623 = vrot.lane.b32.xlu1 %v3025_v19, %s2586_s30 }
 0x604   : > { %v1626_v42 = vpop.permute.xlu1 %1625 }
 0x605   : > { %v1631_v25 = vsel %vm441_vm2, %v1626_v42, 0  ;;  %1365 = vadd.xlane.f32.xlu2 %v1364_v45 }
 0x606   : > { %1640 = vmatpush.bf16.xpose.msra.mxu2 %v1631_v25 }
 0x60c   : > { %v3070_v48 = vpop.permute.xlu1 %1594 }
 0x60d   : > { %1374 = vadd.xlane.f32.xlu2 %v1373_v50 }
 0x614   : > { %v1481_v4 = vpop.permute.xlu1 %1480 }
 0x615   : > { %1493 = vmatpush.bf16.msrb.mxu3 %v1481_v4 }
 0x625   : > { %1652 = vrot.lane.b32.xlu2 %v3058_v38, %s2586_s30 }
 0x62f   : > { %v1354_v30 = vpop.xlane.xlu2 %1353 }
 0x630   : > { %2448 = vrcp.f32 %v1354_v30 }
 0x636   : > { %v2449_v54 = vpop.eup %2448 }
 0x637   : > { %v1568_v51 = vpop.permute.xlu2 %1567  ;;  %v1384_v44 = vmul.f32 %v2449_v54, %v3033_v43 }
 0x638   : > { %v1573_v53 = vsel %vm441_vm2, %v1568_v51, 0  ;;  %v2229_v51 = vld [vmem:[%s3289_s1 + $0x30] sm:$0xff] }
 0x639   : > { %1582 = vmatpush.bf16.xpose.msra.mxu0 %v1573_v53  ;;  %v1392_v52 = vpack.c.bf16 %v1384_v44, %v1384_v44 }
 0x63b   : > { %v1402_v61 = vunpack.c.l.b16 %v1392_v52 }
 0x63f   : > { %v1357_v21 = vpop.xlane.xlu1 %1356 }
 0x640   : > { %2450 = vrcp.f32 %v1357_v21  ;;  %v1676_v21 = vld [vmem:[#allocation4] sm:$0xff] }
 0x646   : > { %v2451_v56 = vpop.eup %2450 }
 0x647   : > { %v1385_v20 = vmul.f32 %v2451_v56, %v3037_v1  ;;  %v1363_v5 = vpop.xlane.xlu1 %1362  ;;  %v2230_v56 = vld [vmem:[%s3289_s1 + $0x38] sm:$0xff] }
 0x648   : > { %2452 = vrcp.f32 %v1363_v5 }
 0x649   : > { %v1393_v59 = vpack.c.bf16 %v1385_v20, %v1385_v20  ;;  %v1677_v20 = vld [vmem:[#allocation4 + $0x8] sm:$0xff] }
 0x64b   : > { %v1403_v62 = vunpack.c.l.b16 %v1393_v59 }
 0x64d   : > { %v1404_v63 = vpack.c.b16 %v1403_v62, %v1402_v61 }
 0x64e   : > { %v2453_v58 = vpop.eup %2452 }
 0x64f   : > { %2225 = vmatmul.msk.bf16.vlgmr.msrb.gmra.mxu0 %vm559_vm3, %v1404_v63  ;;  %v1387_v1 = vmul.f32 %v2453_v58, %v3041_v2 }
 0x651   : > { %v1395_v15 = vpack.c.bf16 %v1387_v1, %v1387_v1 }
 0x653   : > { %v1428_v6 = vunpack.c.l.b16 %v1395_v15 }
 0x65c   : > { %v1372_v33 = vpop.xlane.xlu0 %1371 }
 0x65d   : > { %v1369_v0 = vpop.xlane.xlu1 %1368 }
 0x65f   : > { %2235 = vmatmul.msk.bf16.vlgmr.msra.gmra.mxu0 %vm441_vm2, %v1566_v32 }
 0x66f   : > { %v1655_v7 = vpop.permute.xlu0 %1654 }
 0x670   : > { %v1660_v10 = vsel %vm441_vm2, %v1655_v7, 0  ;;  %v1360_v43 = vpop.xlane.xlu2 %1359 }
 0x671   : > { %2454 = vrcp.f32 %v1360_v43  ;;  %1669 = vmatpush.bf16.xpose.msra.mxu3 %v1660_v10 }
 0x672   : > { %2456 = vrcp.f32 %v1369_v0  ;;  %v1678_v0 = vld [vmem:[#allocation4 + $0x10] sm:$0xff] }
 0x675   : > { %v1624_v4 = vpop.permute.xlu1 %1623 }
 0x677   : > { %v2455_v3 = vpop.eup %2454 }
 0x678   : > { %v1386_v16 = vmul.f32 %v2455_v3, %v2443_v35  ;;  %v1366_v31 = vpop.xlane.xlu2 %1365  ;;  %v2457_v55 = vpop.eup %2456 }
 0x679   : > { %2458 = vrcp.f32 %v1366_v31  ;;  %v1389_v24 = vmul.f32 %v2457_v55, %v3049_v22 }
 0x67a   : > { %v1394_v23 = vpack.c.bf16 %v1386_v16, %v1386_v16  ;;  %2460 = vrcp.f32 %v1372_v33  ;;  %v1679_v16 = vld [vmem:[#allocation4 + $0x18] sm:$0xff] }
 0x67b   : > { %v1397_v29 = vpack.c.bf16 %v1389_v24, %v1389_v24 }
 0x67c   : > { %v1427_v26 = vunpack.c.l.b16 %v1394_v23 }
 0x67d   : > { %v1453_v40 = vunpack.c.l.b16 %v1397_v29 }
 0x67e   : > { %v1429_v28 = vpack.c.b16 %v1428_v6, %v1427_v26  ;;  %v1680_v26 = vld [vmem:[#allocation4 + $0x20] sm:$0xff] }
 0x67f   : > { %v2459_v49 = vpop.eup %2458 }
 0x680   : > { %v1388_v32 = vmul.f32 %v2459_v49, %v2445_v41  ;;  %2226 = vmatmul.msk.bf16.vlgmr.msrb.gmra.mxu1 %vm559_vm3, %v1429_v28  ;;  %v1375_v34 = vpop.xlane.xlu2 %1374  ;;  %v2461_v2 = vpop.eup %2460 }
 0x681   : > { %2462 = vrcp.f32 %v1375_v34  ;;  %v1390_v35 = vmul.f32 %v2461_v2, %v3047_v17  ;;  %v1681_v2 = vld [vmem:[#allocation4 + $0x28] sm:$0xff] }
 0x682   : > { %v1396_v37 = vpack.c.bf16 %v1388_v32, %v1388_v32 }
 0x683   : > { %v1398_v42 = vpack.c.bf16 %v1390_v35, %v1390_v35 }
 0x684   : > { %v1452_v27 = vunpack.c.l.b16 %v1396_v37  ;;  %v1682_v37 = vld [vmem:[#allocation4 + $0x30] sm:$0xff] }
 0x685   : > { %v1477_v25 = vunpack.c.l.b16 %v1398_v42 }
 0x686   : > { %v1454_v39 = vpack.c.b16 %v1453_v40, %v1452_v27 }
 0x687   : > { %v2463_v57 = vpop.eup %2462 }
 0x688   : > { %v1391_v22 = vmul.f32 %v2463_v57, %v3068_v47  ;;  %2227 = vmatmul.msk.bf16.vlgmr.msrb.gmra.mxu2 %vm559_vm3, %v1454_v39  ;;  %v1653_v17 = vpop.permute.xlu2 %1652 }
 0x68a   : > { %v1399_v45 = vpack.c.bf16 %v1391_v22, %v1391_v22 }
 0x68c   : > { %v1478_v41 = vunpack.c.l.b16 %v1399_v45  ;;  %v1683_v45 = vld [vmem:[#allocation4 + $0x38] sm:$0xff] }
 0x68e   : > { %v1479_v50 = vpack.c.b16 %v1478_v41, %v1477_v25 }
 0x690   : > { %2228 = vmatmul.msk.bf16.vlgmr.msrb.gmra.mxu3 %vm559_vm3, %v1479_v50  ;;  %2240 = vmatmul.msk.bf16.vlgmr.msra.gmra.mxu1 %vm441_vm2, %v3070_v48 }
 0x698   : > { %2245 = vmatmul.msk.bf16.vlgmr.msra.gmra.mxu2 %vm441_vm2, %v1624_v4 }
 0x6a0   : > { %2250 = vmatmul.msk.bf16.vlgmr.msra.gmra.mxu3 %vm441_vm2, %v1653_v17 }
 0x6cc   : > { %v3093_v30 = vpop.f32.mrf.mxu0 }
 0x6d4   : > { %v3095_v47 = vpop.f32.mrf.mxu0 }
 0x6dc   : > { %v1584_v53 = vpop.f32.mrf.mxu0 }
 0x6dd   : > { %v1585_v54 = vadd.f32 %v2229_v51, %v1584_v53 }
 0x6df   : > { %v1684_v44 = vadd.f32 %v1676_v21, %v1585_v54 }
 0x6e1   : > { %v1692_v48 = vsel %vm559_vm3, %v1684_v44, -inf }
 0x6e2   : > { %1693 = vmax.xlane.f32.xlu1 %v1692_v48 }
 0x6e4   : > { %v1586_v52 = vpop.f32.mrf.mxu0 }
 0x6e5   : > { %v1587_v59 = vadd.f32 %v2230_v56, %v1586_v52 }
 0x6e7   : > { %v1685_v61 = vadd.f32 %v1677_v20, %v1587_v59 }
 0x6e9   : > { %v1695_v62 = vsel %vm559_vm3, %v1685_v61, -inf }
 0x6ea   : > { %1696 = vmax.xlane.f32.xlu0 %v1695_v62 }
 0x6fd   : > { %v3105_v63 = vpop.f32.mrf.mxu1 }
 0x705   : > { %v3107_v33 = vpop.f32.mrf.mxu1 }
 0x70b   : > { %v3109_v5 = vpop.f32.mrf.mxu2 }
 0x70d   : > { %v1613_v7 = vpop.f32.mrf.mxu1 }
 0x70e   : > { %v1614_v10 = vadd.f32 %v2229_v51, %v1613_v7 }
 0x710   : > { %v1686_v43 = vadd.f32 %v1678_v0, %v1614_v10 }
 0x712   : > { %v1698_v58 = vsel %vm559_vm3, %v1686_v43, -inf }
 0x713   : > { %1699 = vmax.xlane.f32.xlu2 %v1698_v58  ;;  %v3112_v1 = vpop.f32.mrf.mxu2  ;;  %v3114_v3 = vpop.f32.mrf.mxu3 }
 0x715   : > { %v1615_v15 = vpop.f32.mrf.mxu1 }
 0x716   : > { %v1616_v31 = vadd.f32 %v2230_v56, %v1615_v15 }
 0x718   : > { %v1687_v55 = vadd.f32 %v1679_v16, %v1616_v31 }
 0x71a   : > { %v1701_v23 = vsel %vm559_vm3, %v1687_v55, -inf }
 0x71b   : > { %1702 = vmax.xlane.f32.xlu1 %v1701_v23  ;;  %v3117_v6 = vpop.f32.mrf.mxu3  ;;  %v1642_v24 = vpop.f32.mrf.mxu2 }
 0x71c   : > { %v1643_v28 = vadd.f32 %v2229_v51, %v1642_v24 }
 0x71e   : > { %v1688_v49 = vadd.f32 %v1680_v26, %v1643_v28 }
 0x720   : > { %v1704_v29 = vsel %vm559_vm3, %v1688_v49, -inf }
 0x723   : > { %v1644_v32 = vpop.f32.mrf.mxu2  ;;  %1705 = vmax.xlane.f32.xlu1 %v1704_v29  ;;  %v1671_v34 = vpop.f32.mrf.mxu3 }
 0x724   : > { %v1645_v35 = vadd.f32 %v2230_v56, %v1644_v32  ;;  %v1672_v40 = vadd.f32 %v2229_v51, %v1671_v34 }
 0x726   : > { %v3120_v27 = vadd.f32 %v1681_v2, %v1645_v35  ;;  %v1690_v39 = vadd.f32 %v1682_v37, %v1672_v40  ;;  %v1500_v2 = vpack.c.bf16 %v3093_v30, %v3093_v30  ;;  %v1115_v37 = vpack.c.bf16 %v2975_v13, %v2975_v13 }
 0x727   : > { %v1116_v13 = vpack.c.bf16 %v2990_v36, %v2990_v36 }
 0x728   : > { %v1707_v57 = vsel %vm559_vm3, %v3120_v27, -inf  ;;  %v1710_v42 = vsel %vm559_vm3, %v1690_v39, -inf }
 0x729   : > { %1708 = vmax.xlane.f32.xlu0 %v1707_v57 }
 0x72b   : > { %v1673_v22 = vpop.f32.mrf.mxu3  ;;  %1711 = vmax.xlane.f32.xlu1 %v1710_v42 }
 0x72c   : > { %v1674_v25 = vadd.f32 %v2230_v56, %v1673_v22 }
 0x72e   : > { %v3125_v41 = vadd.f32 %v1683_v45, %v1674_v25 }
 0x730   : > { %v1713_v50 = vsel %vm559_vm3, %v3125_v41, -inf }
 0x731   : > { %1714 = vmax.xlane.f32.xlu2 %v1713_v50 }
 0x749   : > { %1793 = vrot.lane.b32.xlu2 %v3015_v9, %s2588_s13 }
 0x755   : > { %v1694_v4 = vpop.xlane.xlu1 %1693 }
 0x756   : > { %v1716_v17 = vsub.f32 %v1684_v44, %v1694_v4 }
 0x758   : > { %v1724_v51 = vmul.f32 1.442695, %v1716_v17 }
 0x75a   : > { %2464 = vpow2.f32 %v1724_v51 }
 0x75d   : > { %v1697_v53 = vpop.xlane.xlu0 %1696 }
 0x75e   : > { %v1717_v21 = vsub.f32 %v1685_v61, %v1697_v53  ;;  %v1118_v53 = vpack.c.bf16 %v2993_v60, %v2993_v60  ;;  %v1113_v60 = vpack.c.bf16 %v2968_v11, %v2968_v11 }
 0x760   : > { %v3131_v54 = vpop.eup %2464  ;;  %v1726_v48 = vmul.f32 1.442695, %v1717_v21 }
 0x761   : > { %v1740_v56 = vsel %vm559_vm3, %v3131_v54, 0.0 }
 0x762   : > { %2466 = vpow2.f32 %v1726_v48  ;;  %1741 = vadd.xlane.f32.xlu0 %v1740_v56 }
 0x768   : > { %v3135_v52 = vpop.eup %2466 }
 0x769   : > { %v1743_v20 = vsel %vm559_vm3, %v3135_v52, 0.0 }
 0x76a   : > { %1744 = vadd.xlane.f32.xlu1 %v1743_v20 }
 0x786   : > { %v1700_v9 = vpop.xlane.xlu2 %1699 }
 0x787   : > { %v1718_v44 = vsub.f32 %v1686_v43, %v1700_v9 }
 0x789   : > { %v1728_v59 = vmul.f32 1.442695, %v1718_v44 }
 0x78b   : > { %2468 = vpow2.f32 %v1728_v59 }
 0x78e   : > { %v1703_v62 = vpop.xlane.xlu1 %1702 }
 0x78f   : > { %v1719_v61 = vsub.f32 %v1687_v55, %v1703_v62 }
 0x791   : > { %v3139_v7 = vpop.eup %2468  ;;  %v1730_v0 = vmul.f32 1.442695, %v1719_v61 }
 0x792   : > { %v1746_v10 = vsel %vm559_vm3, %v3139_v7, 0.0 }
 0x793   : > { %2470 = vpow2.f32 %v1730_v0  ;;  %1747 = vadd.xlane.f32.xlu0 %v1746_v10 }
 0x796   : > { %v1706_v58 = vpop.xlane.xlu1 %1705 }
 0x797   : > { %v1720_v15 = vsub.f32 %v1688_v49, %v1706_v58 }
 0x799   : > { %v3143_v16 = vpop.eup %2470  ;;  %v1732_v31 = vmul.f32 1.442695, %v1720_v15 }
 0x79a   : > { %v1749_v43 = vsel %vm559_vm3, %v3143_v16, 0.0 }
 0x79b   : > { %2472 = vpow2.f32 %v1732_v31  ;;  %1750 = vadd.xlane.f32.xlu1 %v1749_v43 }
 0x79c   : > { %v1709_v35 = vpop.xlane.xlu0 %1708 }
 0x79d   : > { %v1721_v40 = vsub.f32 %v3120_v27, %v1709_v35 }
 0x79e   : > { %v1712_v23 = vpop.xlane.xlu1 %1711 }
 0x79f   : > { %v1722_v55 = vsub.f32 %v1690_v39, %v1712_v23  ;;  %v1734_v39 = vmul.f32 1.442695, %v1721_v40 }
 0x7a1   : > { %v3147_v24 = vpop.eup %2472  ;;  %v1736_v26 = vmul.f32 1.442695, %v1722_v55 }
 0x7a2   : > { %v1752_v28 = vsel %vm559_vm3, %v3147_v24, 0.0 }
 0x7a3   : > { %2474 = vpow2.f32 %v1736_v26  ;;  %1753 = vadd.xlane.f32.xlu0 %v1752_v28 }
 0x7a4   : > { %v1715_v29 = vpop.xlane.xlu2 %1714  ;;  %2476 = vpow2.f32 %v1734_v39 }
 0x7a9   : > { %v3151_v49 = vpop.eup %2474 }
 0x7aa   : > { %v1758_v32 = vsel %vm559_vm3, %v3151_v49, 0.0  ;;  %v3172_v42 = vpop.eup %2476 }
 0x7ab   : > { %1759 = vadd.xlane.f32.xlu2 %v1758_v32 }
 0x7ac   : > { %v1794_v34 = vpop.permute.xlu2 %1793 }
 0x7ad   : > { %1806 = vmatpush.bf16.msrb.mxu0 %v1794_v34 }
 0x7b4   : > { %1843 = vrot.lane.b32.xlu1 %v3025_v19, %s2588_s13  ;;  %v1723_v19 = vsub.f32 %v3125_v41, %v1715_v29  ;;  %v1505_v41 = vpack.c.bf16 %v3112_v1, %v3112_v1  ;;  %v1507_v1 = vpack.c.bf16 %v3117_v6, %v3117_v6 }
 0x7b6   : > { %v1738_v57 = vmul.f32 1.442695, %v1723_v19 }
 0x7b7   : > { %1818 = vrot.lane.b32.xlu0 %v3019_v14, %s2588_s13  ;;  %v1503_v14 = vpack.c.bf16 %v3107_v33, %v3107_v33  ;;  %v1755_v33 = vsel %vm559_vm3, %v3172_v42, 0.0 }
 0x7b8   : > { %2478 = vpow2.f32 %v1738_v57 }
 0x7be   : > { %v3175_v27 = vpop.eup %2478 }
 0x7bf   : > { %v1761_v25 = vsel %vm559_vm3, %v3175_v27, 0.0 }
 0x7c3   : > { %1516 = vrot.lane.b32.xlu2 %v1500_v2, %s2589_s14 }
 0x7cb   : > { %1134 = vrot.lane.b32.xlu2 %v1115_v37, %s2590_s15 }
 0x7d3   : > { %1522 = vrot.lane.b32.xlu2 %v1503_v14, %s2589_s14 }
 0x7d5   : > { %v1742_v30 = vpop.xlane.xlu0 %1741 }
 0x7d6   : > { %2480 = vrcp.f32 %v1742_v30 }
 0x7db   : > { %1136 = vrot.lane.b32.xlu2 %v1116_v13, %s2590_s15 }
 0x7dc   : > { %v2481_v45 = vpop.eup %2480 }
 0x7dd   : > { %v1745_v22 = vpop.xlane.xlu1 %1744  ;;  %v1772_v36 = vmul.f32 %v2481_v45, %v3131_v54  ;;  %v1112_v54 = vpack.c.bf16 %v2966_v8, %v2966_v8 }
 0x7de   : > { %2482 = vrcp.f32 %v1745_v22  ;;  %1756 = vadd.xlane.f32.xlu1 %v1755_v33 }
 0x7df   : > { %v1780_v4 = vpack.c.bf16 %v1772_v36, %v1772_v36 }
 0x7e1   : > { %1762 = vadd.xlane.f32.xlu0 %v1761_v25  ;;  %v1790_v21 = vunpack.c.l.b16 %v1780_v4 }
 0x7e3   : > { %1526 = vrot.lane.b32.xlu2 %v1505_v41, %s2589_s14 }
 0x7e4   : > { %v2483_v50 = vpop.eup %2482 }
 0x7e5   : > { %v1773_v17 = vmul.f32 %v2483_v50, %v3135_v52  ;;  %v1501_v52 = vpack.c.bf16 %v3095_v47, %v3095_v47 }
 0x7e7   : > { %v1781_v51 = vpack.c.bf16 %v1773_v17, %v1773_v17 }
 0x7e9   : > { %v1791_v48 = vunpack.c.l.b16 %v1781_v51  ;;  %v1502_v51 = vpack.c.bf16 %v3105_v63, %v3105_v63  ;;  %v1504_v63 = vpack.c.bf16 %v3109_v5, %v3109_v5 }
 0x7eb   : > { %v1792_v56 = vpack.c.b16 %v1791_v48, %v1790_v21  ;;  %1140 = vrot.lane.b32.xlu2 %v1118_v53, %s2590_s15 }
 0x7ed   : > { %2251 = vmatmul.msk.bf16.vlgmr.msrb.gmra.mxu0 %vm559_vm3, %v1792_v56  ;;  %v1117_v56 = vpack.c.bf16 %v2995_v46, %v2995_v46 }
 0x7f3   : > { %1530 = vrot.lane.b32.xlu2 %v1507_v1, %s2589_s14 }
 0x7f7   : > { %1868 = vrot.lane.b32.xlu1 %v3058_v38, %s2588_s13 }
 0x7ff   : > { %1128 = vrot.lane.b32.xlu1 %v1112_v54, %s2590_s15  ;;  %v2312_v54 = vld [vmem:[#allocation6 + $0x8] sm:$0xff] }
 0x800   : > { %2003 = vmatpush.bf16.msra.mxu0 %v2312_v54 }
 0x806   : > { %v1748_v20 = vpop.xlane.xlu0 %1747 }
 0x807   : > { %1130 = vrot.lane.b32.xlu1 %v1113_v60, %s2590_s15  ;;  %v2311_v60 = vld [vmem:[#allocation6] sm:$0xff] }
 0x808   : > { %2004 = vmatpush.bf16.msra.mxu0 %v2311_v60 }
 0x80e   : > { %v1751_v6 = vpop.xlane.xlu1 %1750 }
 0x80f   : > { %1518 = vrot.lane.b32.xlu1 %v1501_v52, %s2589_s14  ;;  %2484 = vrcp.f32 %v1751_v6 }
 0x810   : > { %2486 = vrcp.f32 %v1748_v20 }
 0x815   : > { %v2485_v38 = vpop.eup %2484 }
 0x816   : > { %v2487_v9 = vpop.eup %2486  ;;  %v1775_v8 = vmul.f32 %v2485_v38, %v3143_v16  ;;  %v1754_v62 = vpop.xlane.xlu0 %1753 }
 0x817   : > { %v1774_v59 = vmul.f32 %v2487_v9, %v3139_v7  ;;  %2488 = vrcp.f32 %v1754_v62  ;;  %v1119_v9 = vpack.c.bf16 %v2997_v18, %v2997_v18 }
 0x818   : > { %v1783_v11 = vpack.c.bf16 %v1775_v8, %v1775_v8 }
 0x819   : > { %v1782_v61 = vpack.c.bf16 %v1774_v59, %v1774_v59 }
 0x81a   : > { %v1816_v58 = vunpack.c.l.b16 %v1783_v11  ;;  %v1506_v11 = vpack.c.bf16 %v3114_v3, %v3114_v3 }
 0x81b   : > { %v1815_v47 = vunpack.c.l.b16 %v1782_v61 }
 0x81d   : > { %v1817_v31 = vpack.c.b16 %v1816_v58, %v1815_v47  ;;  %v2489_v28 = vpop.eup %2488 }
 0x81e   : > { %v1760_v44 = vpop.xlane.xlu2 %1759  ;;  %v1776_v32 = vmul.f32 %v2489_v28, %v3147_v24  ;;  %v2367_v28 = vld [vmem:[%s3294_s6] ss:$0 sm:$0xff] }
 0x820   : > { %v1784_v2 = vpack.c.bf16 %v1776_v32, %v1776_v32 }
 0x822   : > { %v1840_v19 = vunpack.c.l.b16 %v1784_v2 }
 0x826   : > { %v1517_v0 = vpop.permute.xlu2 %1516  ;;  %v1844_v10 = vpop.permute.xlu1 %1843 }
 0x827   : > { %1856 = vmatpush.bf16.msrb.mxu2 %v1844_v10 }
 0x829   : > { %v1819_v15 = vpop.permute.xlu0 %1818 }
 0x82a   : > { %1831 = vmatpush.bf16.msrb.mxu1 %v1819_v15 }
 0x82d   : > { %2252 = vmatmul.msk.bf16.vlgmr.msrb.gmra.mxu1 %vm559_vm3, %v1817_v31 }
 0x82e   : > { %v1135_v43 = vpop.permute.xlu2 %1134 }
 0x82f   : > { %1156 = vst.msk [vmem:[#allocation3 + $0xc] sm:$0xf] %vm1152_vm5, %v1135_v43 }
 0x836   : > { %v1523_v16 = vpop.permute.xlu2 %1522 }
 0x837   : > { %1544 = vst.msk [vmem:[#allocation3 + $0xc] sm:$0xf] %vm1540_vm6, %v1523_v16 }
 0x83e   : > { %v1137_v7 = vpop.permute.xlu2 %1136 }
 0x83f   : > { %1157 = vst.msk [vmem:[#allocation3 + $0x10] sm:$0xf] %vm1152_vm5, %v1137_v7 }
 0x846   : > { %v3210_v23 = vpop.permute.xlu2 %1526 }
 0x84e   : > { %v1141_v55 = vpop.permute.xlu2 %1140 }
 0x84f   : > { %1159 = vst.msk [vmem:[#allocation3 + $0x18] sm:$0xf] %vm1152_vm5, %v1141_v55 }
 0x851   : > { %v1757_v26 = vpop.xlane.xlu1 %1756 }
 0x852   : > { %2490 = vrcp.f32 %v1757_v26 }
 0x854   : > { %v1763_v29 = vpop.xlane.xlu0 %1762 }
 0x855   : > { %2492 = vrcp.f32 %v1763_v29 }
 0x856   : > { %2494 = vrcp.f32 %v1760_v44  ;;  %v1531_v7 = vpop.permute.xlu2 %1530 }
 0x858   : > { %v2491_v34 = vpop.eup %2490 }
 0x859   : > { %v1777_v37 = vmul.f32 %v2491_v34, %v3172_v42 }
 0x85b   : > { %v1785_v35 = vpack.c.bf16 %v1777_v37, %v1777_v37  ;;  %v2493_v40 = vpop.eup %2492 }
 0x85c   : > { %v2495_v14 = vpop.eup %2494  ;;  %v1779_v30 = vmul.f32 %v2493_v40, %v3175_v27  ;;  %v1114_v27 = vpack.c.bf16 %v2970_v12, %v2970_v12 }
 0x85d   : > { %v1841_v39 = vunpack.c.l.b16 %v1785_v35  ;;  %v1778_v13 = vmul.f32 %v2495_v14, %v3151_v49 }
 0x85e   : > { %v1787_v22 = vpack.c.bf16 %v1779_v30, %v1779_v30 }
 0x85f   : > { %v1842_v57 = vpack.c.b16 %v1841_v39, %v1840_v19  ;;  %v1786_v24 = vpack.c.bf16 %v1778_v13, %v1778_v13 }
 0x860   : > { %v1866_v33 = vunpack.c.l.b16 %v1787_v22 }
 0x861   : > { %2253 = vmatmul.msk.bf16.vlgmr.msrb.gmra.mxu2 %vm559_vm3, %v1842_v57  ;;  %v1865_v45 = vunpack.c.l.b16 %v1786_v24 }
 0x863   : > { %v1867_v42 = vpack.c.b16 %v1866_v33, %v1865_v45 }
 0x869   : > { %v1869_v25 = vpop.permute.xlu1 %1868 }
 0x86a   : > { %v1808_v41 = vpop.f32.mrf.mxu0  ;;  %1881 = vmatpush.bf16.msrb.mxu3 %v1869_v25 }
 0x86b   : > { %v1888_v36 = vpack.c.bf16 %v1808_v41, %v1808_v41 }
 0x86d   : > { %1904 = vrot.lane.b32.xlu1 %v1888_v36, %s2591_s16  ;;  %2254 = vmatmul.msk.bf16.vlgmr.msrb.gmra.mxu3 %vm559_vm3, %v1867_v42 }
 0x871   : > { %v1129_v50 = vpop.permute.xlu1 %1128 }
 0x872   : > { %1153 = vst.msk [vmem:[#allocation3] sm:$0xf] %vm1152_vm5, %v1129_v50  ;;  %v1810_v49 = vpop.f32.mrf.mxu0 }
 0x873   : > { %1541 = vst.msk [vmem:[#allocation3] sm:$0xf] %vm1540_vm6, %v1517_v0  ;;  %v1889_v4 = vpack.c.bf16 %v1810_v49, %v1810_v49 }
 0x875   : > { %1132 = vrot.lane.b32.xlu1 %v1114_v27, %s2590_s15  ;;  %1906 = vrot.lane.b32.xlu0 %v1889_v4, %s2591_s16 }
 0x879   : > { %v1131_v17 = vpop.permute.xlu1 %1130 }
 0x87a   : > { %1154 = vst.msk [vmem:[#allocation3 + $0x4] sm:$0xf] %vm1152_vm5, %v1131_v17 }
 0x87d   : > { %1520 = vrot.lane.b32.xlu1 %v1502_v51, %s2589_s14 }
 0x881   : > { %v1519_v53 = vpop.permute.xlu1 %1518 }
 0x882   : > { %1542 = vst.msk [vmem:[#allocation3 + $0x4] sm:$0xf] %vm1540_vm6, %v1519_v53 }
 0x8aa   : > { %v1833_v21 = vpop.f32.mrf.mxu1 }
 0x8ab   : > { %v1890_v12 = vpack.c.bf16 %v1833_v21, %v1833_v21 }
 0x8ad   : > { %1908 = vrot.lane.b32.xlu1 %v1890_v12, %s2591_s16 }
 0x8b2   : > { %v1835_v48 = vpop.f32.mrf.mxu1 }
 0x8b3   : > { %v1891_v1 = vpack.c.bf16 %v1835_v48, %v1835_v48 }
 0x8b5   : > { %1138 = vrot.lane.b32.xlu1 %v1117_v56, %s2590_s15  ;;  %1910 = vrot.lane.b32.xlu0 %v1891_v1, %s2591_s16 }
 0x8bd   : > { %1524 = vrot.lane.b32.xlu0 %v1504_v63, %s2589_s14 }
 0x8df   : > { %v1905_v52 = vpop.permute.xlu1 %1904 }
 0x8e0   : > { %1929 = vst.msk [vmem:[#allocation3] sm:$0xf] %vm1928_vm7, %v1905_v52 }
 0x8e4   : > { %v1858_v6 = vpop.f32.mrf.mxu2 }
 0x8e5   : > { %v1892_v46 = vpack.c.bf16 %v1858_v6, %v1858_v6 }
 0x8e7   : > { %v1133_v20 = vpop.permute.xlu1 %1132  ;;  %1912 = vrot.lane.b32.xlu1 %v1892_v46, %s2591_s16  ;;  %v1907_v38 = vpop.permute.xlu0 %1906 }
 0x8e8   : > { %1155 = vst.msk [vmem:[#allocation3 + $0x8] sm:$0xf] %vm1152_vm5, %v1133_v20 }
 0x8e9   : > { %1930 = vst.msk [vmem:[#allocation3 + $0x4] sm:$0xf] %vm1928_vm7, %v1907_v38 }
 0x8ec   : > { %v1860_v5 = vpop.f32.mrf.mxu2 }
 0x8ed   : > { %v1893_v44 = vpack.c.bf16 %v1860_v5, %v1860_v5 }
 0x8ef   : > { %v1521_v8 = vpop.permute.xlu1 %1520  ;;  %1142 = vrot.lane.b32.xlu1 %v1119_v9, %s2590_s15  ;;  %1914 = vrot.lane.b32.xlu0 %v1893_v44, %s2591_s16 }
 0x8f0   : > { %1543 = vst.msk [vmem:[#allocation3 + $0x8] sm:$0xf] %vm1540_vm6, %v1521_v8  ;;  %v1883_v59 = vpop.f32.mrf.mxu3  ;;  %v2307_v62 = vld [vmem:[#allocation3] sm:$0xff] }
 0x8f1   : > { %2279 = vmatmul.msk.bf16.vlgmr.msra.gmra.mxu0 %vm365_vm0, %v2307_v62  ;;  %v1894_v61 = vpack.c.bf16 %v1883_v59, %v1883_v59 }
 0x8f7   : > { %1528 = vrot.lane.b32.xlu0 %v1506_v11, %s2589_s14  ;;  %1916 = vrot.lane.b32.xlu1 %v1894_v61, %s2591_s16 }
 0x8f8   : > { %v1885_v18 = vpop.f32.mrf.mxu3 }
 0x8f9   : > { %v1895_v0 = vpack.c.bf16 %v1885_v18, %v1885_v18 }
 0x8ff   : > { %1918 = vrot.lane.b32.xlu0 %v1895_v0, %s2591_s16 }
 0x91f   : > { %v1909_v10 = vpop.permute.xlu1 %1908 }
 0x920   : > { %1931 = vst.msk [vmem:[#allocation3 + $0x8] sm:$0xf] %vm1928_vm7, %v1909_v10 }
 0x927   : > { %v1139_v58 = vpop.permute.xlu1 %1138  ;;  %v1911_v47 = vpop.permute.xlu0 %1910 }
 0x928   : > { %1158 = vst.msk [vmem:[#allocation3 + $0x14] sm:$0xf] %vm1152_vm5, %v1139_v58 }
 0x929   : > { %1546 = vst.msk [vmem:[#allocation3 + $0x14] sm:$0xf] %vm1540_vm6, %v3210_v23 }
 0x92a   : > { %1932 = vst.msk [vmem:[#allocation3 + $0xc] sm:$0xf] %vm1928_vm7, %v1911_v47 }
 0x92f   : > { %v1525_v3 = vpop.permute.xlu0 %1524 }
 0x930   : > { %1545 = vst.msk [vmem:[#allocation3 + $0x10] sm:$0xf] %vm1540_vm6, %v1525_v3 }
 0x931   : > { %v2308_v15 = vld [vmem:[#allocation3 + $0x8] sm:$0xff] }
 0x932   : > { %2280 = vmatmul.msk.bf16.gmra.mxu0 %vm365_vm0, %v2308_v15 }
 0x959   : > { %v1913_v31 = vpop.permute.xlu1 %1912 }
 0x95a   : > { %1933 = vst.msk [vmem:[#allocation3 + $0x10] sm:$0xf] %vm1928_vm7, %v1913_v31 }
 0x961   : > { %v1143_v43 = vpop.permute.xlu1 %1142  ;;  %v1915_v16 = vpop.permute.xlu0 %1914 }
 0x962   : > { %1160 = vst.msk [vmem:[#allocation3 + $0x1c] sm:$0xf] %vm1152_vm5, %v1143_v43 }
 0x963   : > { %1548 = vst.msk [vmem:[#allocation3 + $0x1c] sm:$0xf] %vm1540_vm6, %v1531_v7 }
 0x964   : > { %1934 = vst.msk [vmem:[#allocation3 + $0x14] sm:$0xf] %vm1928_vm7, %v1915_v16 }
 0x969   : > { %v1917_v23 = vpop.permute.xlu1 %1916  ;;  %v1529_v55 = vpop.permute.xlu0 %1528 }
 0x96a   : > { %1547 = vst.msk [vmem:[#allocation3 + $0x18] sm:$0xf] %vm1540_vm6, %v1529_v55 }
 0x96b   : > { %1935 = vst.msk [vmem:[#allocation3 + $0x18] sm:$0xf] %vm1928_vm7, %v1917_v23  ;;  %v2309_v26 = vld [vmem:[#allocation3 + $0x10] sm:$0xff] }
 0x96c   : > { %2281 = vmatmul.msk.bf16.gmra.mxu0 %vm365_vm0, %v2309_v26 }
 0x96e   : > { %v2006_v29 = vpop.f32.mrf.mxu0 }
 0x96f   : > { %v2007_v32 = vadd.f32 %v2367_v28, %v2006_v29 }
 0x971   : > { %v1919_v34 = vpop.permute.xlu0 %1918  ;;  %2026 = vst.msk [vmem:[%s314_s23] sm:$0xff] %vm365_vm0, %v2007_v32 }
 0x972   : > { %1936 = vst.msk [vmem:[#allocation3 + $0x1c] sm:$0xf] %vm1928_vm7, %v1919_v34 }
 0x976   : > { %v2008_v2 = vpop.f32.mrf.mxu0 }
 0x977   : > { %v2009_v37 = vadd.f32 %v2367_v28, %v2008_v2 }
 0x979   : > { %2027 = vst.msk [vmem:[%s314_s23 + $0x8] sm:$0xff] %vm365_vm0, %v2009_v37  ;;  %v2310_v35 = vld [vmem:[#allocation3 + $0x18] sm:$0xff] }
 0x97c   : > { %2282 = vmatmul.msk.bf16.gmra.mxu0 %vm365_vm0, %v2310_v35 }
 0x9af   : > { %v2011_v40 = vpop.f32.mrf.mxu0 }
 0x9b0   : > { %v2012_v19 = vadd.f32 %v2367_v28, %v2011_v40 }
 0x9b2   : > { %2028 = vst.msk [vmem:[%s314_s23 + $0x10] sm:$0xff] %vm365_vm0, %v2012_v19 }
 0x9b7   : > { %v2013_v39 = vpop.f32.mrf.mxu0 }
 0x9b8   : > { %v2014_v14 = vadd.f32 %v2367_v28, %v2013_v39 }
 0x9ba   : > { %2029 = vst.msk [vmem:[%s314_s23 + $0x18] sm:$0xff] %vm365_vm0, %v2014_v14 }
 0x9e9   : > { %v2016_v57 = vpop.f32.mrf.mxu0 }
 0x9ea   : > { %v2017_v30 = vadd.f32 %v2367_v28, %v2016_v57 }
 0x9ec   : > { %2030 = vst.msk [vmem:[%s314_s23 + $0x20] sm:$0xff] %vm365_vm0, %v2017_v30 }
 0x9f1   : > { %v2018_v13 = vpop.f32.mrf.mxu0 }
 0x9f2   : > { %v2019_v22 = vadd.f32 %v2367_v28, %v2018_v13 }
 0x9f4   : > { %2031 = vst.msk [vmem:[%s314_s23 + $0x28] sm:$0xff] %vm365_vm0, %v2019_v22 }
 0x9f9   : > { %v2021_v24 = vpop.f32.mrf.mxu0 }
 0x9fa   : > { %v2022_v33 = vadd.f32 %v2367_v28, %v2021_v24 }
 0x9fc   : > { %2032 = vst.msk [vmem:[%s314_s23 + $0x30] sm:$0xff] %vm365_vm0, %v2022_v33 }
 0xa01   : > { %v2023_v45 = vpop.f32.mrf.mxu0 }
 0xa02   : > { %v2024_v25 = vadd.f32 %v2367_v28, %v2023_v45 }
 0xa04   : > { %2033 = vst.msk [vmem:[%s314_s23 + $0x38] sm:$0xff] %vm365_vm0, %v2024_v25 }
 0xa05 PF: > { %s19_s24 = sadd.s32 1, %s2570_s24  }
 0xa06   : > { %p16_p7 = scmp.ge.s32.totalorder %s19_s24, 4  }
 0xa08   :  { %18 = sbr.rel (!%p16_p7) target bundleno = 2 (0x2), region = 90 }
 0xa0d   :  { %2056 = vsyncpa [#allocation5], 1 }
 0xa0e   :  { %2058 = vsyncpa [#allocation5 + $0x1], 1 }
 0xa0f   :  { %2059 = vsyncpa [#allocation7], 1 }

</bundles_post_ra>
